<compile_context>
chip_gen: v7x
topology: tpu7x:2x2x1
jax: 0.10.0
libtpu: 0.0.40
codegen_flags: <defaults>
</compile_context>

<pallas_src>
import numpy as np
import jax
import jax.numpy as jnp
from jax.experimental import pallas as pl
from jax.experimental.pallas import tpu as pltpu

# ----------------------------- synthetic SMPL sizes -----------------------------
V = 512                 # mesh vertices (lane-friendly multiple of 128)
NB = 10                 # shape (beta) coefficients
NJ = 24                 # SMPL joints
NP = (NJ - 1) * 9       # 207 pose-blend features
NC = 1 + NB + NP        # 218 fused blend coefficients (constant-1 col folds in v_template)
NH = 17                 # H36M joints
NREG = 128              # lane-dense fused regressor width (17 H36M + 24 SMPL + zero pad)

PELVIS_IDX = 0          # constants.H36M_J17_NAME.index('Pelvis')
H36M_J17_TO_J14 = [3, 2, 1, 4, 5, 6, 16, 15, 14, 11, 12, 13, 8, 10]
PARENTS = np.array([-1, 0, 0, 0, 1, 2, 3, 4, 5, 6, 7, 8, 9, 9, 9,
                    12, 13, 14, 16, 17, 18, 19, 20, 21], dtype=np.int32)


def _tree_levels(parents):
    """Group joints by depth in the kinematic tree -> level-batched forward kinematics."""
    depth = np.zeros(len(parents), dtype=np.int64)
    for i in range(1, len(parents)):
        depth[i] = depth[parents[i]] + 1
    levels = []
    for d in range(1, int(depth.max()) + 1):
        idx = np.where(depth == d)[0].astype(np.int32)
        levels.append((idx, parents[idx]))
    return levels


TREE_LEVELS = _tree_levels(PARENTS)


# ================================ Pallas kernel ================================
def _smpl_lbs_kernel(coeff_ref, bdir_ref, at_ref, wt_ref, reg_ref,
                     vert_ref, vmp_ref, jreg_ref):
    """Fused blend, LBS skinning, fused joint regression, pelvis subtraction."""
    b3, v = vert_ref.shape
    bsz = b3 // 3

    # fused template + shape + pose blend for the whole batch (bf16 MXU, f32 accumulate):
    # (B, 218) @ (218, 3V) -> (B, 3V); coordinate c lives in lane slice [c*V, (c+1)*V).
    v_posed = jnp.dot(coeff_ref[...], bdir_ref[...],
                      preferred_element_type=jnp.float32)
    x = v_posed[:, 0 * v:1 * v]                                       # (B, V) lane slices
    y = v_posed[:, 1 * v:2 * v]
    z = v_posed[:, 2 * v:3 * v]

    # per-vertex skinning transforms, (c, k)-grouped rows with b fastest, dead bottom
    # affine row dropped: (12B, NJ) @ (NJ, V) -> (12B, V);
    # block (c, k) = rows [(4c+k)B, (4c+k+1)B) holds T[b, v, c, k].
    t = jnp.dot(at_ref[...], wt_ref[...], preferred_element_type=jnp.float32)

    # affine apply as full-(B, V)-tile FMAs; output rows are c-major: row c*B + b.
    blocks = []
    for c in range(3):
        base = 4 * c * bsz
        t0 = t[base + 0 * bsz:base + 1 * bsz, :]
        t1 = t[base + 1 * bsz:base + 2 * bsz, :]
        t2 = t[base + 2 * bsz:base + 3 * bsz, :]
        t3 = t[base + 3 * bsz:base + 4 * bsz, :]
        blocks.append(t0 * x + t1 * y + t2 * z + t3)
    verts = jnp.concatenate(blocks, axis=0)                           # (3B, V), in vregs

    vert_ref[...] = verts                                             # one full-block store

    # fused H36M(17) + SMPL(24) joint regression against the lane-dense (V, 128) regressor,
    # fed directly from the in-vreg vertices (no VMEM round trip).
    jreg = jnp.dot(verts, reg_ref[...], preferred_element_type=jnp.float32)   # (3B, 128)
    jreg_ref[...] = jreg

    # pelvis = H36M 'Pelvis' -> column PELVIS_IDX of the fused regression output.
    vmp_ref[...] = verts - jreg[:, PELVIS_IDX:PELVIS_IDX + 1]


def smpl_lbs(coeffs, a_t_rows, params):
    B = coeffs.shape[0]
    out_shapes = (
        jax.ShapeDtypeStruct((3 * B, V), jnp.float32),     # skinned vertices, rows (c, b)
        jax.ShapeDtypeStruct((3 * B, V), jnp.float32),     # vertices - pelvis
        jax.ShapeDtypeStruct((3 * B, NREG), jnp.float32),  # fused joint regression
    )
    return pl.pallas_call(
        _smpl_lbs_kernel,
        out_shape=out_shapes,
        grid=(1,),
        in_specs=[
            pl.BlockSpec((B, NC), lambda i: (0, 0)),           # bf16 [1 || beta || pose_feat]
            pl.BlockSpec((NC, 3 * V), lambda i: (0, 0)),       # bf16 [v_template; shape; pose]dirs
            pl.BlockSpec((12 * B, NJ), lambda i: (0, 0)),      # A[:, :, :3, :] rows, (c,k)-major
            pl.BlockSpec((NJ, V), lambda i: (0, 0)),           # lbs_weights^T (f32)
            pl.BlockSpec((V, NREG), lambda i: (0, 0)),         # fused padded regressor (f32)
        ],
        out_specs=(
            pl.BlockSpec((3 * B, V), lambda i: (0, 0)),
            pl.BlockSpec((3 * B, V), lambda i: (0, 0)),
            pl.BlockSpec((3 * B, NREG), lambda i: (0, 0)),
        ),
        compiler_params=pltpu.CompilerParams(
            dimension_semantics=("arbitrary",),
            vmem_limit_bytes=32 * 1024 * 1024),
    )(coeffs, params['blenddirs'], a_t_rows, params['lbs_weights_T'], params['reg_fused'])


# ================================ JAX glue (tiny ops) ================================
def batch_rodrigues(rot_vecs):
    """axis-angle (N,3) -> rotation matrices (N,3,3)."""
    angle = jnp.linalg.norm(rot_vecs + 1e-8, axis=1, keepdims=True)      # (N,1)
    rot_dir = rot_vecs / angle
    cos = jnp.cos(angle)[:, None, :]                                     # (N,1,1)
    sin = jnp.sin(angle)[:, None, :]
    rx, ry, rz = jnp.split(rot_dir, 3, axis=1)
    zeros = jnp.zeros_like(rx)
    K = jnp.concatenate([zeros, -rz, ry, rz, zeros, -rx, -ry, rx, zeros],
                        axis=1).reshape(-1, 3, 3)
    ident = jnp.eye(3, dtype=rot_vecs.dtype)[None]
    return ident + sin * K + (1.0 - cos) * jnp.matmul(K, K)


def _transform_mat(R, t):
    top = jnp.concatenate([R, t[..., None]], axis=-1)                    # (...,3,4)
    bottom = jnp.broadcast_to(jnp.array([0., 0., 0., 1.], R.dtype),
                              top.shape[:-2] + (1, 4))
    return jnp.concatenate([top, bottom], axis=-2)


def batch_rigid_transform(rot_mats, joints, parents):
    """Forward kinematics over the SMPL tree, batched per tree-depth level (8 matmuls)."""
    rel_joints = joints.at[:, 1:].add(-joints[:, parents[1:]])
    local = _transform_mat(rot_mats, rel_joints)                         # (B,NJ,4,4)
    glob = local                                                         # root is global
    for child_idx, parent_idx in TREE_LEVELS:
        upd = jnp.matmul(glob[:, parent_idx], local[:, child_idx])       # (B,n_d,4,4)
        glob = glob.at[:, child_idx].set(upd)
    posed_joints = glob[:, :, :3, 3]
    joints_h = jnp.concatenate([joints, jnp.zeros_like(joints[..., :1])], axis=-1)
    init_bone = jnp.matmul(glob, joints_h[..., None])                    # (B,NJ,4,1)
    pad = jnp.concatenate(
        [jnp.zeros(glob.shape[:-1] + (3,), glob.dtype), init_bone], axis=-1)
    return posed_joints, glob - pad


def orthographic_projection(X, camera):
    """X: (B,N,3), camera: (B,3) = [scale, tx, ty]  ->  (B,N,2)."""
    camera = camera.reshape(-1, 1, 3)
    X_trans = X[:, :, :2] + camera[:, :, 1:]
    return camera[:, :, 0:1] * X_trans


# ================================ forward wrapper ================================
def smpl_handler_forward(theta, beta, params, theta_form='axis-angle', cam=None):
    B = theta.shape[0]
    hp = jax.lax.Precision.HIGHEST

    if theta_form == 'axis-angle':
        rot_mats = batch_rodrigues(theta.reshape(-1, 3)).reshape(B, NJ, 3, 3)
    elif theta_form == 'rot-matrix':
        rot_mats = theta.reshape(B, NJ, 3, 3)
    else:
        raise NotImplementedError('Unknown theta form: {}'.format(theta_form))

    # rest-pose joints from precomputed (regressor@template, regressor@shapedirs): tiny dot.
    J_rest = params['J_rest0'][None] + jnp.einsum(
        'bn,njc->bjc', beta, params['shapedirs_J'], precision=hp)        # (B,NJ,3)

    pose_feature = (rot_mats[:, 1:] - jnp.eye(3, dtype=jnp.float32)).reshape(B, NP)
    _, A = batch_rigid_transform(rot_mats, J_rest, PARENTS)              # (B,NJ,4,4)

    # fused blend coefficients; constant-1 column folds v_template into the blend matmul.
    # Fed to the MXU in bf16 (the blend-dirs constants are stored bf16).
    coeffs = jnp.concatenate(
        [jnp.ones((B, 1), jnp.float32), beta, pose_feature], axis=-1
    ).astype(jnp.bfloat16)                                               # (B, 218)

    # A[:, :, :3, :] rows grouped (coordinate, affine-column)-major with b fastest, so the
    # skinning matmul yields contiguous (B, V) coordinate blocks; dead [0,0,0,1] row dropped.
    a_t_rows = A[:, :, :3, :].transpose(2, 3, 0, 1).reshape(12 * B, NJ)  # (12B, NJ)

    verts_rows, vmp_rows, jreg = smpl_lbs(coeffs, a_t_rows, params)

    vertices = verts_rows.reshape(3, B, V).transpose(1, 2, 0)            # (B,V,3)
    vertices_minus_pelvis = vmp_rows.reshape(3, B, V).transpose(1, 2, 0)
    jall = jreg.reshape(3, B, NREG).transpose(1, 2, 0)                   # (B,128,3)
    joints17 = jall[:, :NH]                                              # (B,17,3)
    smpl_joints = jall[:, NH:NH + NJ]                                    # (B,24,3)

    pelvis = joints17[:, PELVIS_IDX, :]                                  # (B,3)
    joints = joints17[:, H36M_J17_TO_J14, :]                             # (B,14,3)
    joints_minus_pelvis = joints - pelvis[:, None, :]

    output = {'smpl_joints': smpl_joints,
              'joints': joints,
              'joints_minus_pelvis': joints_minus_pelvis,
              'vertices': vertices,
              'vertices_minus_pelvis': vertices_minus_pelvis,
              'theta': theta,
              'beta': beta}
    if cam is not None:
        output.update({'joints2d': orthographic_projection(joints, cam),
                       'smpl_joints2d': orthographic_projection(smpl_joints, cam),
                       'cam': cam})
    return output


# ================================ synthetic parameters ================================
def make_smpl_params(key):
    ks = jax.random.split(key, 6)
    # Constants that feed the fused blend matmul are defined as bf16-representable values,
    # so storing/streaming them as bf16 is lossless w.r.t. the f32 reference.
    q = lambda a: a.astype(jnp.bfloat16).astype(jnp.float32)
    v_template = q(0.1 * jax.random.normal(ks[0], (3, V), jnp.float32))
    shapedirs = q(0.03 * jax.random.normal(ks[1], (NB, 3, V), jnp.float32))
    posedirs = q(0.01 * jax.random.normal(ks[2], (NP, 3, V), jnp.float32))
    J_reg_smpl = jax.nn.softmax(2.0 * jax.random.normal(ks[3], (NJ, V), jnp.float32), axis=-1)
    J_reg_h36m = jax.nn.softmax(2.0 * jax.random.normal(ks[4], (NH, V), jnp.float32), axis=-1)
    lbs_weights = jax.nn.softmax(2.0 * jax.random.normal(ks[5], (V, NJ), jnp.float32), axis=-1)

    hp = jax.lax.Precision.HIGHEST
    # fused [template ; shape ; pose] blend matrix, flat coordinate-major layout, bf16.
    blenddirs = jnp.concatenate([v_template.reshape(1, 3 * V),
                                 shapedirs.reshape(NB, 3 * V),
                                 posedirs.reshape(NP, 3 * V)],
                                axis=0).astype(jnp.bfloat16)                     # (218, 3V)
    # fused, zero-padded, lane-dense joint regressor: cols [0:17]=H36M^T, [17:41]=SMPL24^T.
    reg_fused = jnp.zeros((V, NREG), jnp.float32)
    reg_fused = reg_fused.at[:, :NH].set(J_reg_h36m.T)
    reg_fused = reg_fused.at[:, NH:NH + NJ].set(J_reg_smpl.T)
    # precomputed rest-joint regression terms (eliminates a shape-blend kernel).
    J_rest0 = jnp.einsum('jv,cv->jc', J_reg_smpl, v_template, precision=hp)      # (NJ,3)
    shapedirs_J = jnp.einsum('jv,ncv->njc', J_reg_smpl, shapedirs, precision=hp)  # (NB,NJ,3)

    return {
        # kernel operands
        'blenddirs': blenddirs,                   # (218, 3V) bf16
        'lbs_weights_T': lbs_weights.T,           # (NJ, V)  f32
        'reg_fused': reg_fused,                   # (V, 128) f32
        # tiny host-side (plain JAX) operands
        'J_rest0': J_rest0,
        'shapedirs_J': shapedirs_J,
        # raw f32 buffers kept for the pure-JAX reference
        'v_template': v_template.reshape(1, 3 * V),
        'shapedirs': shapedirs.reshape(NB, 3 * V),
        'posedirs': posedirs.reshape(NP, 3 * V),
        'J_reg_smpl': J_reg_smpl,
        'J_reg_h36m': J_reg_h36m,
        'lbs_weights': lbs_weights,
    }


# ================================ pure-JAX reference ================================
def reference_forward(theta, beta, params):
    hp = jax.lax.Precision.HIGHEST
    B = theta.shape[0]
    rot_mats = batch_rodrigues(theta.reshape(-1, 3)).reshape(B, NJ, 3, 3)
    v_shaped = (params['v_template'] +
                jnp.dot(beta, params['shapedirs'], precision=hp)).reshape(B, 3, V)
    J_rest = jnp.einsum('jv,bcv->bjc', params['J_reg_smpl'], v_shaped, precision=hp)
    pose_feature = (rot_mats[:, 1:] - jnp.eye(3, dtype=jnp.float32)).reshape(B, NP)
    _, A = batch_rigid_transform(rot_mats, J_rest, PARENTS)
    pose_off = jnp.dot(pose_feature, params['posedirs'], precision=hp).reshape(B, 3, V)
    v_posed = v_shaped + pose_off
    T = jnp.einsum('vj,bjm->bvm', params['lbs_weights'], A.reshape(B, NJ, 16),
                   precision=hp).reshape(B, V, 4, 4)
    vh = jnp.concatenate([v_posed.transpose(0, 2, 1),
                          jnp.ones((B, V, 1), jnp.float32)], axis=-1)
    verts = jnp.einsum('bvrk,bvk->bvr', T, vh, precision=hp)[..., :3]     # (B,V,3)
    joints17 = jnp.einsum('bik,ji->bjk', verts, params['J_reg_h36m'], precision=hp)
    smpl_joints = jnp.einsum('bik,ji->bjk', verts, params['J_reg_smpl'], precision=hp)
    pelvis = joints17[:, PELVIS_IDX, :]
    joints = joints17[:, H36M_J17_TO_J14, :]
    return {'vertices': verts, 'smpl_joints': smpl_joints, 'joints': joints,
            'vertices_minus_pelvis': verts - pelvis[:, None, :],
            'joints_minus_pelvis': joints - pelvis[:, None, :]}


# ================================ main ================================
if __name__ == "__main__":
    B = 2
    key = jax.random.PRNGKey(0)
    kt, kb, kc = jax.random.split(key, 3)
    theta = 0.3 * jax.random.normal(kt, (B, NJ * 3), jnp.float32)    # axis-angle pose (72,)
    beta = jax.random.normal(kb, (B, NB), jnp.float32)               # shape coeffs (10,)
    cam = jnp.concatenate([jnp.ones((B, 1), jnp.float32),
                           0.1 * jax.random.normal(kc, (B, 2), jnp.float32)], axis=-1)

    params = make_smpl_params(jax.random.PRNGKey(42))

    out = smpl_handler_forward(theta, beta, params, theta_form='axis-angle', cam=cam)
    jax.block_until_ready(out)

    ref = reference_forward(theta, beta, params)
    # tolerance slightly loosened vs an all-f32 pipeline: the blend coefficients
    # (beta / pose features) are fed to the MXU in bf16.
    for k in ['vertices', 'vertices_minus_pelvis', 'smpl_joints',
              'joints', 'joints_minus_pelvis']:
        np.testing.assert_allclose(np.asarray(out[k]), np.asarray(ref[k]),
                                   atol=3e-3, rtol=3e-3)
    assert out['joints'].shape == (B, 14, 3)
    assert out['smpl_joints'].shape == (B, NJ, 3)
    assert out['vertices'].shape == (B, V, 3)
    assert out['vertices_minus_pelvis'].shape == (B, V, 3)
    assert out['joints2d'].shape == (B, 14, 2)
    assert out['smpl_joints2d'].shape == (B, NJ, 2)

    print("KERNEL_OK")
</pallas_src>

<mosaic_0001>
module attributes {stable_mosaic.version = 11 : i64} {
  func.func @_smpl_lbs_kernel(%arg0: i32, %arg1: memref<2x218xbf16, #tpu.memory_space<vmem>>, %arg2: memref<218x1536xbf16, #tpu.memory_space<vmem>>, %arg3: memref<24x24xf32, #tpu.memory_space<vmem>>, %arg4: memref<24x512xf32, #tpu.memory_space<vmem>>, %arg5: memref<512x128xf32, #tpu.memory_space<vmem>>, %arg6: memref<6x512xf32, #tpu.memory_space<vmem>>, %arg7: memref<6x512xf32, #tpu.memory_space<vmem>>, %arg8: memref<6x128xf32, #tpu.memory_space<vmem>>) attributes {dimension_semantics = [#tpu.dimension_semantics<arbitrary>], iteration_bounds = array<i64: 1>, scalar_prefetch = 0 : i64, scratch_operands = 0 : i64, tpu.core_type = #tpu.core_type<tc>, window_params = [{pipeline_mode = #tpu.pipeline_mode<synchronous>, transform_indices = @transform_0, window_bounds = array<i64: 2, 218>}, {pipeline_mode = #tpu.pipeline_mode<synchronous>, transform_indices = @transform_1, window_bounds = array<i64: 218, 1536>}, {pipeline_mode = #tpu.pipeline_mode<synchronous>, transform_indices = @transform_2, window_bounds = array<i64: 24, 24>}, {pipeline_mode = #tpu.pipeline_mode<synchronous>, transform_indices = @transform_3, window_bounds = array<i64: 24, 512>}, {pipeline_mode = #tpu.pipeline_mode<synchronous>, transform_indices = @transform_4, window_bounds = array<i64: 512, 128>}, {pipeline_mode = #tpu.pipeline_mode<synchronous>, transform_indices = @transform_5, window_bounds = array<i64: 6, 512>}, {pipeline_mode = #tpu.pipeline_mode<synchronous>, transform_indices = @transform_6, window_bounds = array<i64: 6, 512>}, {pipeline_mode = #tpu.pipeline_mode<synchronous>, transform_indices = @transform_7, window_bounds = array<i64: 6, 128>}]} {
    %c0 = arith.constant 0 : index
    %c0_0 = arith.constant 0 : index
    %0 = vector.load %arg1[%c0, %c0_0] : memref<2x218xbf16, #tpu.memory_space<vmem>>, vector<2x218xbf16>
    %c0_1 = arith.constant 0 : index
    %c0_2 = arith.constant 0 : index
    %1 = vector.load %arg2[%c0_1, %c0_2] : memref<218x1536xbf16, #tpu.memory_space<vmem>>, vector<218x1536xbf16>
    %cst = arith.constant dense<0.000000e+00> : vector<2x1536xf32>
    %2 = tpu.matmul %0, %1, %cst {dimension_numbers = #tpu.dot_dimension_numbers<[1], [0], [0], [1], [0, 0, 1, 1], [], []>} : vector<2x218xbf16>, vector<218x1536xbf16>, vector<2x1536xf32> -> vector<2x1536xf32>
    %3 = vector.extract_strided_slice %2 {offsets = [0, 0], sizes = [2, 512], strides = [1, 1]} : vector<2x1536xf32> to vector<2x512xf32>
    %4 = vector.extract_strided_slice %2 {offsets = [0, 512], sizes = [2, 512], strides = [1, 1]} : vector<2x1536xf32> to vector<2x512xf32>
    %5 = vector.extract_strided_slice %2 {offsets = [0, 1024], sizes = [2, 512], strides = [1, 1]} : vector<2x1536xf32> to vector<2x512xf32>
    %c0_3 = arith.constant 0 : index
    %c0_4 = arith.constant 0 : index
    %6 = vector.load %arg3[%c0_3, %c0_4] : memref<24x24xf32, #tpu.memory_space<vmem>>, vector<24x24xf32>
    %c0_5 = arith.constant 0 : index
    %c0_6 = arith.constant 0 : index
    %7 = vector.load %arg4[%c0_5, %c0_6] : memref<24x512xf32, #tpu.memory_space<vmem>>, vector<24x512xf32>
    %cst_7 = arith.constant dense<0.000000e+00> : vector<24x512xf32>
    %8 = tpu.matmul %6, %7, %cst_7 {dimension_numbers = #tpu.dot_dimension_numbers<[1], [0], [0], [1], [0, 0, 1, 1], [], []>} : vector<24x24xf32>, vector<24x512xf32>, vector<24x512xf32> -> vector<24x512xf32>
    %9 = vector.extract_strided_slice %8 {offsets = [0, 0], sizes = [2, 512], strides = [1, 1]} : vector<24x512xf32> to vector<2x512xf32>
    %10 = vector.extract_strided_slice %8 {offsets = [2, 0], sizes = [2, 512], strides = [1, 1]} : vector<24x512xf32> to vector<2x512xf32>
    %11 = vector.extract_strided_slice %8 {offsets = [4, 0], sizes = [2, 512], strides = [1, 1]} : vector<24x512xf32> to vector<2x512xf32>
    %12 = vector.extract_strided_slice %8 {offsets = [6, 0], sizes = [2, 512], strides = [1, 1]} : vector<24x512xf32> to vector<2x512xf32>
    %13 = arith.mulf %9, %3 : vector<2x512xf32>
    %14 = arith.mulf %10, %4 : vector<2x512xf32>
    %15 = arith.addf %13, %14 : vector<2x512xf32>
    %16 = arith.mulf %11, %5 : vector<2x512xf32>
    %17 = arith.addf %15, %16 : vector<2x512xf32>
    %18 = arith.addf %17, %12 : vector<2x512xf32>
    %19 = vector.extract_strided_slice %8 {offsets = [8, 0], sizes = [2, 512], strides = [1, 1]} : vector<24x512xf32> to vector<2x512xf32>
    %20 = vector.extract_strided_slice %8 {offsets = [10, 0], sizes = [2, 512], strides = [1, 1]} : vector<24x512xf32> to vector<2x512xf32>
    %21 = vector.extract_strided_slice %8 {offsets = [12, 0], sizes = [2, 512], strides = [1, 1]} : vector<24x512xf32> to vector<2x512xf32>
    %22 = vector.extract_strided_slice %8 {offsets = [14, 0], sizes = [2, 512], strides = [1, 1]} : vector<24x512xf32> to vector<2x512xf32>
    %23 = arith.mulf %19, %3 : vector<2x512xf32>
    %24 = arith.mulf %20, %4 : vector<2x512xf32>
    %25 = arith.addf %23, %24 : vector<2x512xf32>
    %26 = arith.mulf %21, %5 : vector<2x512xf32>
    %27 = arith.addf %25, %26 : vector<2x512xf32>
    %28 = arith.addf %27, %22 : vector<2x512xf32>
    %29 = vector.extract_strided_slice %8 {offsets = [16, 0], sizes = [2, 512], strides = [1, 1]} : vector<24x512xf32> to vector<2x512xf32>
    %30 = vector.extract_strided_slice %8 {offsets = [18, 0], sizes = [2, 512], strides = [1, 1]} : vector<24x512xf32> to vector<2x512xf32>
    %31 = vector.extract_strided_slice %8 {offsets = [20, 0], sizes = [2, 512], strides = [1, 1]} : vector<24x512xf32> to vector<2x512xf32>
    %32 = vector.extract_strided_slice %8 {offsets = [22, 0], sizes = [2, 512], strides = [1, 1]} : vector<24x512xf32> to vector<2x512xf32>
    %33 = arith.mulf %29, %3 : vector<2x512xf32>
    %34 = arith.mulf %30, %4 : vector<2x512xf32>
    %35 = arith.addf %33, %34 : vector<2x512xf32>
    %36 = arith.mulf %31, %5 : vector<2x512xf32>
    %37 = arith.addf %35, %36 : vector<2x512xf32>
    %38 = arith.addf %37, %32 : vector<2x512xf32>
    %39 = tpu.concatenate %18, %28, %38 in 0 : vector<2x512xf32>, vector<2x512xf32>, vector<2x512xf32> -> vector<6x512xf32>
    %c0_8 = arith.constant 0 : index
    %c0_9 = arith.constant 0 : index
    %40 = vector.load %arg6[%c0_8, %c0_9] : memref<6x512xf32, #tpu.memory_space<vmem>>, vector<6x512xf32>
    tpu.vector_store %arg6[%c0_8, %c0_9], %39 {strides = array<i32>} : memref<6x512xf32, #tpu.memory_space<vmem>>, vector<6x512xf32>,
    %c0_10 = arith.constant 0 : index
    %c0_11 = arith.constant 0 : index
    %41 = vector.load %arg5[%c0_10, %c0_11] : memref<512x128xf32, #tpu.memory_space<vmem>>, vector<512x128xf32>
    %cst_12 = arith.constant dense<0.000000e+00> : vector<6x128xf32>
    %42 = tpu.matmul %39, %41, %cst_12 {dimension_numbers = #tpu.dot_dimension_numbers<[1], [0], [0], [1], [0, 0, 1, 1], [], []>} : vector<6x512xf32>, vector<512x128xf32>, vector<6x128xf32> -> vector<6x128xf32>
    %c0_13 = arith.constant 0 : index
    %c0_14 = arith.constant 0 : index
    %43 = vector.load %arg8[%c0_13, %c0_14] : memref<6x128xf32, #tpu.memory_space<vmem>>, vector<6x128xf32>
    tpu.vector_store %arg8[%c0_13, %c0_14], %42 {strides = array<i32>} : memref<6x128xf32, #tpu.memory_space<vmem>>, vector<6x128xf32>,
    %44 = vector.extract_strided_slice %42 {offsets = [0, 0], sizes = [6, 1], strides = [1, 1]} : vector<6x128xf32> to vector<6x1xf32>
    %45 = vector.broadcast %44 : vector<6x1xf32> to vector<6x512xf32>
    %46 = arith.subf %39, %45 : vector<6x512xf32>
    %c0_15 = arith.constant 0 : index
    %c0_16 = arith.constant 0 : index
    %47 = vector.load %arg7[%c0_15, %c0_16] : memref<6x512xf32, #tpu.memory_space<vmem>>, vector<6x512xf32>
    tpu.vector_store %arg7[%c0_15, %c0_16], %46 {strides = array<i32>} : memref<6x512xf32, #tpu.memory_space<vmem>>, vector<6x512xf32>,
    return
  }
  func.func @transform_0(%arg0: i32) -> (i32, i32) {
    %c0_i32 = arith.constant 0 : i32
    %c0_i32_0 = arith.constant 0 : i32
    %c0_i32_1 = arith.constant 0 : i32
    return %c0_i32, %c0_i32_0 : i32, i32
  }
  func.func @transform_1(%arg0: i32) -> (i32, i32) {
    %c0_i32 = arith.constant 0 : i32
    %c0_i32_0 = arith.constant 0 : i32
    %c0_i32_1 = arith.constant 0 : i32
    return %c0_i32, %c0_i32_0 : i32, i32
  }
  func.func @transform_2(%arg0: i32) -> (i32, i32) {
    %c0_i32 = arith.constant 0 : i32
    %c0_i32_0 = arith.constant 0 : i32
    %c0_i32_1 = arith.constant 0 : i32
    return %c0_i32, %c0_i32_0 : i32, i32
  }
  func.func @transform_3(%arg0: i32) -> (i32, i32) {
    %c0_i32 = arith.constant 0 : i32
    %c0_i32_0 = arith.constant 0 : i32
    %c0_i32_1 = arith.constant 0 : i32
    return %c0_i32, %c0_i32_0 : i32, i32
  }
  func.func @transform_4(%arg0: i32) -> (i32, i32) {
    %c0_i32 = arith.constant 0 : i32
    %c0_i32_0 = arith.constant 0 : i32
    %c0_i32_1 = arith.constant 0 : i32
    return %c0_i32, %c0_i32_0 : i32, i32
  }
  func.func @transform_5(%arg0: i32) -> (i32, i32) {
    %c0_i32 = arith.constant 0 : i32
    %c0_i32_0 = arith.constant 0 : i32
    %c0_i32_1 = arith.constant 0 : i32
    return %c0_i32, %c0_i32_0 : i32, i32
  }
  func.func @transform_6(%arg0: i32) -> (i32, i32) {
    %c0_i32 = arith.constant 0 : i32
    %c0_i32_0 = arith.constant 0 : i32
    %c0_i32_1 = arith.constant 0 : i32
    return %c0_i32, %c0_i32_0 : i32, i32
  }
  func.func @transform_7(%arg0: i32) -> (i32, i32) {
    %c0_i32 = arith.constant 0 : i32
    %c0_i32_0 = arith.constant 0 : i32
    %c0_i32_1 = arith.constant 0 : i32
    return %c0_i32, %c0_i32_0 : i32, i32
  }
}

</mosaic_0001>

<bundles_post_ra>
// kernel: tpu_custom_call.1
= control target key start
LH: loop header
LB: loop body
LE: loop exit
PB: predicated region body
PF: predicated region fallthrough
CT: control target
= control target key end

     0   :  { %13 = vsyncpa [#allocation3], 0  ;;  %s3200_s0 = inlined_call_operand.hbm [shape: bf16[2,218], index: 0, kind: input, shape index: {}]   ;;  %s3201_s1 = inlined_call_operand.hbm [shape: bf16[218,1536], index: 1, kind: input, shape index: {}]   ;;  %s3202_s2 = inlined_call_operand.hbm [shape: f32[24,24], index: 2, kind: input, shape index: {}]   ;;  %s3203_s3 = inlined_call_operand.hbm [shape: f32[24,512], index: 3, kind: input, shape index: {}]   ;;  %s3204_s4 = inlined_call_operand.hbm [shape: f32[512,128], index: 4, kind: input, shape index: {}]   ;;  %s3205_s5 = inlined_call_operand.hbm [shape: f32[6,512], index: 5, kind: output, shape index: {0}]   ;;  %s3206_s6 = inlined_call_operand.hbm [shape: f32[6,512], index: 6, kind: output, shape index: {1}]   ;;  %s3207_s7 = inlined_call_operand.hbm [shape: f32[6,128], index: 7, kind: output, shape index: {2}]  }
   0x1   :  { %14 = vsyncpa [#allocation6], 0 }
   0x2   :  { %15 = vsyncpa [#allocation9], 0 }
   0x3   :  { %16 = vsyncpa [#allocation4], 0 }
   0x4   :  { %17 = vsyncpa [#allocation13], 0  ;;  %s2880_s24 = smov [#allocation5]   ;;  %s2694_s28 = scalar_lea.hbm %s3201_s1, 21504 }
   0x5   :  { %s33_s25 = sshll.u32 %s2880_s24, 4  ;;  %p2695_p0 = scmp.ne.s32.totalorder %s3201_s1, %s2694_s28  ;;  %s34_s25 = int_to_ptr.vmem [resolvable:$true] %s33_s25 }
   0x6   :  { %p2698_p1 = scmp.lt.u32.totalorder %s2694_s28, %s3201_s1 }
   0x8   :  { %p2700_p2 = pnand %p2698_p1, %p2695_p0 }
   0xa   :  { %2703 = shalt.err (!%p2700_p2)
}
   0xb   :  { %s2704_s10 = scalar_lea.vmem %s34_s25, 21504  ;;  %p2709_p4 = scmp.lt.s32.totalorder %s34_s25, %s34_s25 }
   0xc   :  { %p2705_p3 = scmp.ne.s32.totalorder %s34_s25, %s2704_s10  ;;  %p2710_p5 = scmp.lt.s32.totalorder %s2704_s10, %s2704_s10 }
   0xe   :  { %p2711_p6 = por %p2710_p5, %p2709_p4 }
  0x10   :  { %p2712_p7 = pnand %p2711_p6, %p2705_p3 }
  0x12   :  { %2715 = shalt.err (!%p2712_p7)
}
  0x13   :  { %s2881_s11 = smov 768   ;;  %s2882_s12 = smov 48  }
  0x14   :  { %39 = dma.hbm_to_vmem [thread:$0]  %s3201_s1, 21504, %s34_s25, [#allocation6], %s2881_s11, %s2881_s11, %s2882_s12  }
  0x15   :  { %s2883_s15 = smov [#allocation8]   ;;  %s2716_s19 = scalar_lea.hbm %s3203_s3, 1536 }
  0x16   :  { %s57_s16 = sshll.u32 %s2883_s15, 4  ;;  %p2717_p8 = scmp.ne.s32.totalorder %s3203_s3, %s2716_s19  ;;  %s58_s16 = int_to_ptr.vmem [resolvable:$true] %s57_s16 }
  0x17   :  { %p2720_p9 = scmp.lt.u32.totalorder %s2716_s19, %s3203_s3 }
  0x19   :  { %p2722_p10 = pnand %p2720_p9, %p2717_p8 }
  0x1b   :  { %2725 = shalt.err (!%p2722_p10)
}
  0x1c   :  { %s2726_s24 = scalar_lea.vmem %s58_s16, 1536  ;;  %p2731_p12 = scmp.lt.s32.totalorder %s58_s16, %s58_s16 }
  0x1d   :  { %p2727_p11 = scmp.ne.s32.totalorder %s58_s16, %s2726_s24  ;;  %p2732_p13 = scmp.lt.s32.totalorder %s2726_s24, %s2726_s24 }
  0x1f   :  { %p2733_p0 = por %p2732_p13, %p2731_p12 }
  0x21   :  { %p2734_p1 = pnand %p2733_p0, %p2727_p11 }
  0x23   :  { %2737 = shalt.err (!%p2734_p1)
}
  0x24   :  { %s2884_s1 = smov 512   ;;  %s2885_s25 = smov 32  }
  0x25   :  { %63 = dma.hbm_to_vmem [thread:$0]  %s3203_s3, 1536, %s58_s16, [#allocation9], %s2884_s1, %s2884_s1, %s2885_s25  }
  0x26   :  { %s2886_s28 = smov [#allocation2]   ;;  %s2887_s30 = smov [#allocation7]  }
  0x27   :  { %s24_s29 = sshll.u32 %s2886_s28, 4  ;;  %s45_s8 = sshll.u32 %s2887_s30, 4  ;;  %s25_s29 = int_to_ptr.vmem [resolvable:$true] %s24_s29  ;;  %s2961_s8 = int_to_ptr.vmem [resolvable:$true] %s45_s8 }
  0x28   :  { %s2738_s11 = scalar_lea.hbm %s3200_s0, 32 }
  0x29   :  { %p2739_p2 = scmp.ne.s32.totalorder %s3200_s0, %s2738_s11  ;;  %p2742_p3 = scmp.lt.u32.totalorder %s2738_s11, %s3200_s0 }
  0x2b   :  { %p2744_p4 = pnand %p2742_p3, %p2739_p2 }
  0x2d   :  { %2747 = shalt.err (!%p2744_p4)
}
  0x2e   :  { %s2748_s3 = scalar_lea.vmem %s25_s29, 32  ;;  %p2753_p6 = scmp.lt.s32.totalorder %s25_s29, %s25_s29 }
  0x2f   :  { %p2749_p5 = scmp.ne.s32.totalorder %s25_s29, %s2748_s3  ;;  %p2754_p7 = scmp.lt.s32.totalorder %s2748_s3, %s2748_s3 }
  0x31   :  { %p2755_p8 = por %p2754_p7, %p2753_p6 }
  0x33   :  { %p2756_p9 = pnand %p2755_p8, %p2749_p5 }
  0x35   :  { %2759 = shalt.err (!%p2756_p9)
}
  0x36   :  { %27 = dma.hbm_to_vmem [thread:$0]  %s3200_s0, 32, %s25_s29, [#allocation3]  }
  0x37   :  { %s2760_s20 = scalar_lea.hbm %s3202_s2, 384 }
  0x38   :  { %p2761_p10 = scmp.ne.s32.totalorder %s3202_s2, %s2760_s20  ;;  %p2764_p11 = scmp.lt.u32.totalorder %s2760_s20, %s3202_s2 }
  0x3a   :  { %p2766_p12 = pnand %p2764_p11, %p2761_p10 }
  0x3c   :  { %2769 = shalt.err (!%p2766_p12)
}
  0x3d   :  { %s2770_s1 = scalar_lea.vmem %s2961_s8, 384  ;;  %p2775_p0 = scmp.lt.s32.totalorder %s2961_s8, %s2961_s8 }
  0x3e   :  { %p2771_p13 = scmp.ne.s32.totalorder %s2961_s8, %s2770_s1  ;;  %p2776_p1 = scmp.lt.s32.totalorder %s2770_s1, %s2770_s1 }
  0x40   :  { %p2777_p2 = por %p2776_p1, %p2775_p0 }
  0x42   :  { %p2778_p3 = pnand %p2777_p2, %p2771_p13 }
  0x44   :  { %2781 = shalt.err (!%p2778_p3)
}
  0x45   :  { %s2888_s0 = smov 128   ;;  %s2889_s25 = smov 8  }
  0x46   :  { %51 = dma.hbm_to_vmem [thread:$0]  %s3202_s2, 384, %s2961_s8, [#allocation6], %s2888_s0, %s2888_s0, %s2889_s25  }
  0x47   :  { %s2890_s28 = smov [#allocation10]   ;;  %s2782_s10 = scalar_lea.hbm %s3204_s4, 8192 }
  0x48   :  { %s69_s29 = sshll.u32 %s2890_s28, 4  ;;  %p2783_p4 = scmp.ne.s32.totalorder %s3204_s4, %s2782_s10  ;;  %s70_s29 = int_to_ptr.vmem [resolvable:$true] %s69_s29 }
  0x49   :  { %p2786_p5 = scmp.lt.u32.totalorder %s2782_s10, %s3204_s4 }
  0x4b   :  { %p2788_p6 = pnand %p2786_p5, %p2783_p4 }
  0x4d   :  { %2791 = shalt.err (!%p2788_p6)
}
  0x4e   :  { %s2792_s15 = scalar_lea.vmem %s70_s29, 8192  ;;  %p2797_p8 = scmp.lt.s32.totalorder %s70_s29, %s70_s29 }
  0x4f   :  { %p2793_p7 = scmp.ne.s32.totalorder %s70_s29, %s2792_s15  ;;  %p2798_p9 = scmp.lt.s32.totalorder %s2792_s15, %s2792_s15 }
  0x51   :  { %p2799_p10 = por %p2798_p9, %p2797_p8 }
  0x53   :  { %p2800_p11 = pnand %p2799_p10, %p2793_p7 }
  0x55   :  { %2803 = shalt.err (!%p2800_p11)
}
  0x56   :  { %75 = dma.hbm_to_vmem [thread:$0]  %s3204_s4, 8192, %s70_s29, [#allocation9], %s2888_s0, %s2888_s0, %s2889_s25  }
  0x57   :  { %2870 = dma.done.wait [#allocation3], 32  }
  0x58   :  { %2871 = vsyncadd [#allocation3], 4294967264 }
  0x59   :  { %2872 = dma.done.wait [#allocation6], 21888  }
  0x5a   :  { %2873 = vsyncadd [#allocation6], 4294945408 }
  0x5b   :  { %2874 = dma.done.wait [#allocation9], 9728  }
  0x5c   :  { %2875 = vsyncadd [#allocation9], 4294957568  ;;  %v2442_v0 = vld [vmem:[#allocation5 + $0x4] ss:$48 sps:$4 sm:$0xff]   ;;  %v2444_v1 = vld [vmem:[#allocation5 + $0xc] ss:$48 sps:$4 sm:$0xff]   ;;  %v273_v36 = vlaneseq }
  0x5d   :  { %1154 = vmatprep.subr.bf16.mxu0 %v2442_v0  ;;  %v2446_v2 = vld [vmem:[#allocation5] ss:$48 sps:$4 sm:$0xff]   ;;  %v2447_v3 = vld [vmem:[#allocation5 + $0x8] ss:$48 sps:$4 sm:$0xff]   ;;  %1195 = vmatprep.subr.bf16.mxu1 %v2444_v1  ;;  %v2448_v4 = vld [vmem:[#allocation5 + $0x64] ss:$48 sps:$4 sm:$0xff]  }
  0x5e   :  { %1155 = vmatpush1.bf16.msra.mxu0 %v2446_v2  ;;  %1196 = vmatpush1.bf16.msra.mxu1 %v2447_v3  ;;  %v2450_v5 = vld [vmem:[#allocation5 + $0x6c] ss:$48 sps:$4 sm:$0xff]   ;;  %v2452_v6 = vld [vmem:[#allocation5 + $0x60] ss:$48 sps:$4 sm:$0xff]   ;;  %v2453_v7 = vld [vmem:[#allocation5 + $0x68] ss:$48 sps:$4 sm:$0xff]  }
  0x5f   :  { %1156 = vmatprep.subr.bf16.mxu0 %v2448_v4  ;;  %1197 = vmatprep.subr.bf16.mxu1 %v2450_v5  ;;  %v2454_v8 = vld [vmem:[#allocation5 + $0xc4] ss:$48 sps:$4 sm:$0xff]   ;;  %v2456_v9 = vld [vmem:[#allocation5 + $0xcc] ss:$48 sps:$4 sm:$0xff]   ;;  %v2458_v10 = vld [vmem:[#allocation5 + $0xc0] ss:$48 sps:$4 sm:$0xff]  }
  0x60   :  { %v2459_v11 = vld [vmem:[#allocation5 + $0xc8] ss:$48 sps:$4 sm:$0xff]   ;;  %v2460_v12 = vld [vmem:[#allocation5 + $0x124] ss:$48 sps:$4 sm:$0xff]   ;;  %v2462_v13 = vld [vmem:[#allocation5 + $0x12c] ss:$48 sps:$4 sm:$0xff]  }
  0x61   :  { %v2464_v14 = vld [vmem:[#allocation5 + $0x120] ss:$48 sps:$4 sm:$0xff]   ;;  %v2465_v15 = vld [vmem:[#allocation5 + $0x128] ss:$48 sps:$4 sm:$0xff]   ;;  %v2466_v16 = vld [vmem:[#allocation5 + $0x184] ss:$48 sps:$4 sm:$0xff]  }
  0x62   :  { %1157 = vmatpush1.bf16.msra.mxu0 %v2452_v6  ;;  %1198 = vmatpush1.bf16.msra.mxu1 %v2453_v7  ;;  %v2468_v17 = vld [vmem:[#allocation5 + $0x18c] ss:$48 sps:$4 sm:$0xff]   ;;  %v2470_v18 = vld [vmem:[#allocation5 + $0x180] ss:$48 sps:$4 sm:$0xff]   ;;  %v2471_v19 = vld [vmem:[#allocation5 + $0x188] ss:$48 sps:$4 sm:$0xff]  }
  0x63   :  { %1158 = vmatprep.subr.bf16.mxu0 %v2454_v8  ;;  %1199 = vmatprep.subr.bf16.mxu1 %v2456_v9  ;;  %v2472_v20 = vld [vmem:[#allocation5 + $0x1e4] ss:$48 sps:$4 sm:$0xff]   ;;  %v2474_v21 = vld [vmem:[#allocation5 + $0x1ec] ss:$48 sps:$4 sm:$0xff]   ;;  %v2476_v22 = vld [vmem:[#allocation5 + $0x1e0] ss:$48 sps:$4 sm:$0xff]  }
  0x64   :  { %v2477_v23 = vld [vmem:[#allocation5 + $0x1e8] ss:$48 sps:$4 sm:$0xff]   ;;  %v2478_v24 = vld [vmem:[#allocation5 + $0x244] ss:$48 sps:$4 sm:$0xff]   ;;  %v2480_v25 = vld [vmem:[#allocation5 + $0x24c] ss:$48 sps:$4 sm:$0xff]  }
  0x65   :  { %v2482_v26 = vld [vmem:[#allocation5 + $0x240] ss:$48 sps:$4 sm:$0xff]   ;;  %v2483_v27 = vld [vmem:[#allocation5 + $0x248] ss:$48 sps:$4 sm:$0xff]   ;;  %v2484_v28 = vld [vmem:[#allocation5 + $0x2a4] ss:$48 sps:$4 sm:$0xff]  }
  0x66   :  { %1159 = vmatpush1.bf16.msra.mxu0 %v2458_v10  ;;  %1200 = vmatpush1.bf16.msra.mxu1 %v2459_v11  ;;  %v2486_v29 = vld [vmem:[#allocation5 + $0x2ac] ss:$48 sps:$4 sm:$0xff]   ;;  %v2488_v30 = vld [vmem:[#allocation5 + $0x2a0] ss:$48 sps:$4 sm:$0xff]   ;;  %v2489_v31 = vld [vmem:[#allocation5 + $0x2a8] ss:$48 sps:$4 sm:$0xff]  }
  0x67   :  { %1160 = vmatprep.subr.bf16.mxu0 %v2460_v12  ;;  %1201 = vmatprep.subr.bf16.mxu1 %v2462_v13  ;;  %v2490_v32 = vld [vmem:[#allocation5 + $0x304] ss:$48 sps:$4 sm:$0xff]   ;;  %v2492_v33 = vld [vmem:[#allocation5 + $0x30c] ss:$48 sps:$4 sm:$0xff]   ;;  %v2891_v34 = vmov 1966171168  }
  0x68   :  { %v271_v35 = vunpack.c.l.s4 %v2891_v34  ;;  %v2494_v37 = vld [vmem:[#allocation5 + $0x300] ss:$48 sps:$4 sm:$0xff]   ;;  %v2495_v38 = vld [vmem:[#allocation5 + $0x308] ss:$48 sps:$4 sm:$0xff]   ;;  %v2496_v39 = vld [vmem:[#allocation5 + $0x364] ss:$48 sps:$4 sm:$0xff]  }
  0x69   :  { %v2498_v40 = vld [vmem:[#allocation5 + $0x36c] ss:$48 sps:$4 sm:$0xff]   ;;  %v274_v42 = vshrl.u32 %v273_v36, 7  ;;  %v2500_v43 = vld [vmem:[#allocation5 + $0x360] ss:$48 sps:$4 sm:$0xff]   ;;  %vm1113_vm0 = vcmask 736256  }
  0x6a   :  { %1161 = vmatpush1.bf16.msra.mxu0 %v2464_v14  ;;  %1202 = vmatpush1.bf16.msra.mxu1 %v2465_v15  ;;  %v272_v41 = vunpack.c.0.s8 %v271_v35  ;;  %v2501_v44 = vld [vmem:[#allocation5 + $0x368] ss:$48 sps:$4 sm:$0xff]   ;;  %v2502_v45 = vld [vmem:[#allocation5 + $0x3c4] ss:$48 sps:$4 sm:$0xff]   ;;  %v2504_v46 = vld [vmem:[#allocation5 + $0x3cc] ss:$48 sps:$4 sm:$0xff]  }
  0x6b   :  { %1162 = vmatprep.subr.bf16.mxu0 %v2466_v16  ;;  %1203 = vmatprep.subr.bf16.mxu1 %v2468_v17  ;;  %v2095_v48 = vld.sshfl [vmem:[#allocation2] sm:$0x11 pattern:$0x75316420]  ;;  %v2506_v49 = vld [vmem:[#allocation5 + $0x3c0] ss:$48 sps:$4 sm:$0xff]  }
  0x6c   :  { %v275_v47 = vsub.s32 %v272_v41, %v274_v42  ;;  %v269_v50 = vcombine.high %v2095_v48, %v2095_v48  ;;  %v2507_v51 = vld [vmem:[#allocation5 + $0x3c8] ss:$48 sps:$4 sm:$0xff]   ;;  %v2508_v52 = vld [vmem:[#allocation5 + $0x424] ss:$48 sps:$4 sm:$0xff]   ;;  %v2510_v53 = vld [vmem:[#allocation5 + $0x42c] ss:$48 sps:$4 sm:$0xff]  }
  0x6d   :  { %v2512_v55 = vld [vmem:[#allocation5 + $0x420] ss:$48 sps:$4 sm:$0xff]   ;;  %v2513_v56 = vld [vmem:[#allocation5 + $0x428] ss:$48 sps:$4 sm:$0xff]   ;;  %v2514_v57 = vld [vmem:[#allocation5 + $0x484] ss:$48 sps:$4 sm:$0xff]  }
  0x6e   :  { %1163 = vmatpush1.bf16.msra.mxu0 %v2470_v18  ;;  %1204 = vmatpush1.bf16.msra.mxu1 %v2471_v19  ;;  %v3004_v54 = vrot.slane %v269_v50, %v275_v47  ;;  %v2516_v58 = vld [vmem:[#allocation5 + $0x48c] ss:$48 sps:$4 sm:$0xff]   ;;  %v2518_v59 = vld [vmem:[#allocation5 + $0x480] ss:$48 sps:$4 sm:$0xff]   ;;  %v2519_v62 = vld [vmem:[#allocation5 + $0x488] ss:$48 sps:$4 sm:$0xff]   ;;  %v3014_v5 = vrot.slane %v2095_v48, %v275_v47 }
  0x6f   :  { %1164 = vmatprep.subr.bf16.mxu0 %v2472_v20  ;;  %1205 = vmatprep.subr.bf16.mxu1 %v2474_v21  ;;  %v2520_v60 = vld [vmem:[#allocation5 + $0x4e4] ss:$48 sps:$4 sm:$0x1f]   ;;  %v2522_v61 = vld [vmem:[#allocation5 + $0x4ec] ss:$48 sps:$4 sm:$0x1f]  }
  0x70   :  { %2265 = vmatprep.mubr.msk.bf16.mxu0 %vm1113_vm0, %v3004_v54  ;;  %2267 = vmatprep.mubr.msk.bf16.mxu1 %vm1113_vm0, %v3004_v54  ;;  %v2524_v63 = vld [vmem:[#allocation5 + $0x4e0] ss:$48 sps:$4 sm:$0x1f]   ;;  %v2525_v0 = vld [vmem:[#allocation5 + $0x4e8] ss:$48 sps:$4 sm:$0x1f]  }
  0x71   :  { %vm1117_vm1 = vcmask 1044480   ;;  %v2528_v1 = vld [vmem:[#allocation5 + $0x14] ss:$48 sps:$4 sm:$0xff]   ;;  %v2531_v4 = vld [vmem:[#allocation5 + $0x1c] ss:$48 sps:$4 sm:$0xff]   ;;  %vm1415_vm2 = vcmask 195584  }
  0x72   :  { %1165 = vmatpush1.bf16.msra.mxu0 %v2476_v22  ;;  %1206 = vmatpush1.bf16.msra.mxu1 %v2477_v23  ;;  %v1119_v2 = vsel %vm1117_vm1, %v2524_v63, 0  ;;  %v1125_v3 = vsel %vm1117_vm1, %v2525_v0, 0  ;;  %v2526_v6 = vld [vmem:[#allocation5 + $0x10] ss:$48 sps:$4 sm:$0xff]   ;;  %v2529_v7 = vld [vmem:[#allocation5 + $0x18] ss:$48 sps:$4 sm:$0xff]  }
  0x73   :  { %1166 = vmatprep.subr.bf16.mxu0 %v2478_v24  ;;  %1207 = vmatprep.subr.bf16.mxu1 %v2480_v25  ;;  %v2534_v8 = vld [vmem:[#allocation5 + $0x74] ss:$48 sps:$4 sm:$0xff]   ;;  %v2537_v9 = vld [vmem:[#allocation5 + $0x7c] ss:$48 sps:$4 sm:$0xff]   ;;  %v2532_v10 = vld [vmem:[#allocation5 + $0x70] ss:$48 sps:$4 sm:$0xff]  }
  0x74   :  { %v2535_v11 = vld [vmem:[#allocation5 + $0x78] ss:$48 sps:$4 sm:$0xff]   ;;  %v2540_v12 = vld [vmem:[#allocation5 + $0xd4] ss:$48 sps:$4 sm:$0xff]   ;;  %v2543_v13 = vld [vmem:[#allocation5 + $0xdc] ss:$48 sps:$4 sm:$0xff]  }
  0x75   :  { %v2538_v14 = vld [vmem:[#allocation5 + $0xd0] ss:$48 sps:$4 sm:$0xff]   ;;  %v2541_v15 = vld [vmem:[#allocation5 + $0xd8] ss:$48 sps:$4 sm:$0xff]   ;;  %v2546_v16 = vld [vmem:[#allocation5 + $0x134] ss:$48 sps:$4 sm:$0xff]  }
  0x76   :  { %1167 = vmatpush1.bf16.msra.mxu0 %v2482_v26  ;;  %1208 = vmatpush1.bf16.msra.mxu1 %v2483_v27  ;;  %v2549_v17 = vld [vmem:[#allocation5 + $0x13c] ss:$48 sps:$4 sm:$0xff]   ;;  %v2544_v18 = vld [vmem:[#allocation5 + $0x130] ss:$48 sps:$4 sm:$0xff]   ;;  %v2547_v19 = vld [vmem:[#allocation5 + $0x138] ss:$48 sps:$4 sm:$0xff]  }
  0x77   :  { %1168 = vmatprep.subr.bf16.mxu0 %v2484_v28  ;;  %1209 = vmatprep.subr.bf16.mxu1 %v2486_v29  ;;  %v2552_v20 = vld [vmem:[#allocation5 + $0x194] ss:$48 sps:$4 sm:$0xff]   ;;  %v2555_v21 = vld [vmem:[#allocation5 + $0x19c] ss:$48 sps:$4 sm:$0xff]   ;;  %v2550_v22 = vld [vmem:[#allocation5 + $0x190] ss:$48 sps:$4 sm:$0xff]  }
  0x78   :  { %v2553_v23 = vld [vmem:[#allocation5 + $0x198] ss:$48 sps:$4 sm:$0xff]   ;;  %v2558_v24 = vld [vmem:[#allocation5 + $0x1f4] ss:$48 sps:$4 sm:$0xff]   ;;  %v2561_v25 = vld [vmem:[#allocation5 + $0x1fc] ss:$48 sps:$4 sm:$0xff]  }
  0x79   :  { %v2556_v26 = vld [vmem:[#allocation5 + $0x1f0] ss:$48 sps:$4 sm:$0xff]   ;;  %v2559_v27 = vld [vmem:[#allocation5 + $0x1f8] ss:$48 sps:$4 sm:$0xff]   ;;  %v2564_v28 = vld [vmem:[#allocation5 + $0x254] ss:$48 sps:$4 sm:$0xff]  }
  0x7a   :  { %1169 = vmatpush1.bf16.msra.mxu0 %v2488_v30  ;;  %1210 = vmatpush1.bf16.msra.mxu1 %v2489_v31  ;;  %v2567_v29 = vld [vmem:[#allocation5 + $0x25c] ss:$48 sps:$4 sm:$0xff]   ;;  %v2562_v30 = vld [vmem:[#allocation5 + $0x250] ss:$48 sps:$4 sm:$0xff]   ;;  %v2565_v31 = vld [vmem:[#allocation5 + $0x258] ss:$48 sps:$4 sm:$0xff]  }
  0x7b   :  { %1170 = vmatprep.subr.bf16.mxu0 %v2490_v32  ;;  %1211 = vmatprep.subr.bf16.mxu1 %v2492_v33  ;;  %v2570_v32 = vld [vmem:[#allocation5 + $0x2b4] ss:$48 sps:$4 sm:$0xff]   ;;  %v2573_v33 = vld [vmem:[#allocation5 + $0x2bc] ss:$48 sps:$4 sm:$0xff]   ;;  %v2568_v34 = vld [vmem:[#allocation5 + $0x2b0] ss:$48 sps:$4 sm:$0xff]  }
  0x7c   :  { %v2571_v35 = vld [vmem:[#allocation5 + $0x2b8] ss:$48 sps:$4 sm:$0xff]   ;;  %v2576_v36 = vld [vmem:[#allocation5 + $0x314] ss:$48 sps:$4 sm:$0xff]   ;;  %v2585_v41 = vld [vmem:[#allocation5 + $0x37c] ss:$48 sps:$4 sm:$0xff]  }
  0x7d   :  { %v2580_v42 = vld [vmem:[#allocation5 + $0x370] ss:$48 sps:$4 sm:$0xff]   ;;  %v2589_v47 = vld [vmem:[#allocation5 + $0x3d8] ss:$48 sps:$4 sm:$0xff]   ;;  %v2594_v48 = vld [vmem:[#allocation5 + $0x434] ss:$48 sps:$4 sm:$0xff]  }
  0x7e   :  { %1171 = vmatpush1.bf16.msra.mxu0 %v2494_v37  ;;  %1212 = vmatpush1.bf16.msra.mxu1 %v2495_v38  ;;  %v2579_v37 = vld [vmem:[#allocation5 + $0x31c] ss:$48 sps:$4 sm:$0xff]   ;;  %v2574_v38 = vld [vmem:[#allocation5 + $0x310] ss:$48 sps:$4 sm:$0xff]   ;;  %vm1819_vm3 = vcmask 1041408   ;;  %vm1824_vm4 = vcmask 1043456  }
  0x7f   :  { %1172 = vmatprep.subr.bf16.mxu0 %v2496_v39  ;;  %1213 = vmatprep.subr.bf16.mxu1 %v2498_v40  ;;  %v2577_v39 = vld [vmem:[#allocation5 + $0x318] ss:$48 sps:$4 sm:$0xff]   ;;  %v2582_v40 = vld [vmem:[#allocation5 + $0x374] ss:$48 sps:$4 sm:$0xff]   ;;  %v2592_v50 = vld [vmem:[#allocation5 + $0x430] ss:$48 sps:$4 sm:$0xff]  }
  0x80   :  { %v2615_v0 = vld [vmem:[#allocation5 + $0x2c] ss:$48 sps:$4 sm:$0xff]   ;;  %s2894_s4 = smov [#allocation11]  }
  0x81   :  { %s2057_s3 = sshll.u32 %s2894_s4, 4  ;;  %s2058_s3 = int_to_ptr.vmem [resolvable:$true] %s2057_s3 }
  0x82   :  { %1173 = vmatpush1.bf16.msra.mxu0 %v2500_v43  ;;  %1214 = vmatpush1.bf16.msra.mxu1 %v2501_v44  ;;  %v2583_v43 = vld [vmem:[#allocation5 + $0x378] ss:$48 sps:$4 sm:$0xff]   ;;  %v2588_v44 = vld [vmem:[#allocation5 + $0x3d4] ss:$48 sps:$4 sm:$0xff]   ;;  %s2804_s16 = scalar_lea.vmem %s2058_s3, 512  ;;  %p2809_p13 = scmp.lt.s32.totalorder %s2058_s3, %s2058_s3 }
  0x83   :  { %1174 = vmatprep.subr.bf16.mxu0 %v2502_v45  ;;  %1215 = vmatprep.subr.bf16.mxu1 %v2504_v46  ;;  %v2591_v45 = vld [vmem:[#allocation5 + $0x3dc] ss:$48 sps:$4 sm:$0xff]   ;;  %v2586_v46 = vld [vmem:[#allocation5 + $0x3d0] ss:$48 sps:$4 sm:$0xff]   ;;  %p2805_p12 = scmp.ne.s32.totalorder %s2058_s3, %s2804_s16  ;;  %p2810_p0 = scmp.lt.s32.totalorder %s2804_s16, %s2804_s16 }
  0x85   :  { %p2811_p1 = por %p2810_p0, %p2809_p13 }
  0x86   :  { %1175 = vmatpush1.bf16.msra.mxu0 %v2506_v49  ;;  %1216 = vmatpush1.bf16.msra.mxu1 %v2507_v51  ;;  %v2597_v49 = vld [vmem:[#allocation5 + $0x43c] ss:$48 sps:$4 sm:$0xff]   ;;  %v2595_v51 = vld [vmem:[#allocation5 + $0x438] ss:$48 sps:$4 sm:$0xff]  }
  0x87   :  { %1176 = vmatprep.subr.bf16.mxu0 %v2508_v52  ;;  %1217 = vmatprep.subr.bf16.mxu1 %v2510_v53  ;;  %v2600_v52 = vld [vmem:[#allocation5 + $0x494] ss:$48 sps:$4 sm:$0xff]   ;;  %v2603_v53 = vld [vmem:[#allocation5 + $0x49c] ss:$48 sps:$4 sm:$0xff]   ;;  %p2812_p2 = pnand %p2811_p1, %p2805_p12 }
  0x8a   :  { %1177 = vmatpush1.bf16.msra.mxu0 %v2512_v55  ;;  %1218 = vmatpush1.bf16.msra.mxu1 %v2513_v56  ;;  %v2598_v55 = vld [vmem:[#allocation5 + $0x490] ss:$48 sps:$4 sm:$0xff]   ;;  %v2601_v56 = vld [vmem:[#allocation5 + $0x498] ss:$48 sps:$4 sm:$0xff]  }
  0x8b   :  { %1178 = vmatprep.subr.bf16.mxu0 %v2514_v57  ;;  %1219 = vmatprep.subr.bf16.mxu1 %v2516_v58  ;;  %v2604_v57 = vld [vmem:[#allocation5 + $0x4f4] ss:$48 sps:$4 sm:$0x1f]   ;;  %v2606_v58 = vld [vmem:[#allocation5 + $0x4fc] ss:$48 sps:$4 sm:$0x1f]  }
  0x8e   :  { %1179 = vmatpush1.bf16.msra.mxu0 %v2518_v59  ;;  %1220 = vmatpush1.bf16.msra.mxu1 %v2519_v62  ;;  %v2608_v59 = vld [vmem:[#allocation5 + $0x4f0] ss:$48 sps:$4 sm:$0x1f]  }
  0x8f   :  { %2264 = vmatprep.subr.msk.bf16.mxu0 %vm1117_vm1, %v2520_v60  ;;  %2266 = vmatprep.subr.msk.bf16.mxu1 %vm1117_vm1, %v2522_v61  ;;  %v2609_v60 = vld [vmem:[#allocation5 + $0x4f8] ss:$48 sps:$4 sm:$0x1f]   ;;  %v2612_v61 = vld [vmem:[#allocation5 + $0x24] ss:$48 sps:$4 sm:$0xff]   ;;  %v1131_v62 = vsel %vm1117_vm1, %v2608_v59, 0 }
  0x90   :  { %v1137_v63 = vsel %vm1117_vm1, %v2609_v60, 0  ;;  %v1410_v59 = vld [vmem:[#allocation8 + $0x38] sm:$0xff]  ;;  %v1403_v60 = vld [vmem:[#allocation8] sm:$0xff] }
  0x92   :  { %1181 = vmatpush1.bf16.msra.mxu0 %v1119_v2  ;;  %1222 = vmatpush1.bf16.msra.mxu1 %v1125_v3  ;;  %v2613_v2 = vld [vmem:[#allocation5 + $0x28] ss:$48 sps:$4 sm:$0xff]   ;;  %v2618_v3 = vld [vmem:[#allocation5 + $0x84] ss:$48 sps:$4 sm:$0xff]  }
  0x93   :  { %1236 = vmatprep.subr.bf16.mxu0 %v2528_v1  ;;  %1277 = vmatprep.subr.bf16.mxu1 %v2531_v4  ;;  %v2610_v1 = vld [vmem:[#allocation5 + $0x20] ss:$48 sps:$4 sm:$0xff]   ;;  %v2621_v4 = vld [vmem:[#allocation5 + $0x8c] ss:$48 sps:$4 sm:$0xff]  }
  0x95   :  { %1187 = vmatmul.mubr.bf16.vlgmr.msra.gmra.mrb[0].mxu0 %v3014_v5  ;;  %1228 = vmatmul.mubr.bf16.vlgmr.msra.gmra.mrb[0].mxu1 %v3014_v5 }
  0x96   :  { %1237 = vmatpush1.bf16.msra.mxu0 %v2526_v6  ;;  %1278 = vmatpush1.bf16.msra.mxu1 %v2529_v7  ;;  %v2616_v6 = vld [vmem:[#allocation5 + $0x80] ss:$48 sps:$4 sm:$0xff]   ;;  %v2619_v7 = vld [vmem:[#allocation5 + $0x88] ss:$48 sps:$4 sm:$0xff]  }
  0x97   :  { %1238 = vmatprep.subr.bf16.mxu0 %v2534_v8  ;;  %1279 = vmatprep.subr.bf16.mxu1 %v2537_v9  ;;  %v2624_v8 = vld [vmem:[#allocation5 + $0xe4] ss:$48 sps:$4 sm:$0xff]   ;;  %v2627_v9 = vld [vmem:[#allocation5 + $0xec] ss:$48 sps:$4 sm:$0xff]  }
  0x98   :  { %2269 = vmatprep.mubr.msk.bf16.mxu0 %vm1113_vm0, %v3004_v54  ;;  %2271 = vmatprep.mubr.msk.bf16.mxu1 %vm1113_vm0, %v3004_v54 }
  0x9a   :  { %1239 = vmatpush1.bf16.msra.mxu0 %v2532_v10  ;;  %1280 = vmatpush1.bf16.msra.mxu1 %v2535_v11  ;;  %v2622_v10 = vld [vmem:[#allocation5 + $0xe0] ss:$48 sps:$4 sm:$0xff]   ;;  %v2625_v11 = vld [vmem:[#allocation5 + $0xe8] ss:$48 sps:$4 sm:$0xff]  }
  0x9b   :  { %1240 = vmatprep.subr.bf16.mxu0 %v2540_v12  ;;  %1281 = vmatprep.subr.bf16.mxu1 %v2543_v13  ;;  %v2630_v12 = vld [vmem:[#allocation5 + $0x144] ss:$48 sps:$4 sm:$0xff]   ;;  %v2633_v13 = vld [vmem:[#allocation5 + $0x14c] ss:$48 sps:$4 sm:$0xff]  }
  0x9e   :  { %1241 = vmatpush1.bf16.msra.mxu0 %v2538_v14  ;;  %1282 = vmatpush1.bf16.msra.mxu1 %v2541_v15  ;;  %v2628_v14 = vld [vmem:[#allocation5 + $0x140] ss:$48 sps:$4 sm:$0xff]   ;;  %v2631_v15 = vld [vmem:[#allocation5 + $0x148] ss:$48 sps:$4 sm:$0xff]  }
  0x9f   :  { %1242 = vmatprep.subr.bf16.mxu0 %v2546_v16  ;;  %1283 = vmatprep.subr.bf16.mxu1 %v2549_v17  ;;  %v2636_v16 = vld [vmem:[#allocation5 + $0x1a4] ss:$48 sps:$4 sm:$0xff]   ;;  %v2639_v17 = vld [vmem:[#allocation5 + $0x1ac] ss:$48 sps:$4 sm:$0xff]  }
  0xa2   :  { %1243 = vmatpush1.bf16.msra.mxu0 %v2544_v18  ;;  %1284 = vmatpush1.bf16.msra.mxu1 %v2547_v19  ;;  %v2634_v18 = vld [vmem:[#allocation5 + $0x1a0] ss:$48 sps:$4 sm:$0xff]   ;;  %v2642_v19 = vld [vmem:[#allocation5 + $0x204] ss:$48 sps:$4 sm:$0xff]  }
  0xa3   :  { %1244 = vmatprep.subr.bf16.mxu0 %v2552_v20  ;;  %1285 = vmatprep.subr.bf16.mxu1 %v2555_v21  ;;  %v2645_v20 = vld [vmem:[#allocation5 + $0x20c] ss:$48 sps:$4 sm:$0xff]   ;;  %v2640_v21 = vld [vmem:[#allocation5 + $0x200] ss:$48 sps:$4 sm:$0xff]  }
  0xa6   :  { %1245 = vmatpush1.bf16.msra.mxu0 %v2550_v22  ;;  %1286 = vmatpush1.bf16.msra.mxu1 %v2553_v23  ;;  %v2643_v22 = vld [vmem:[#allocation5 + $0x208] ss:$48 sps:$4 sm:$0xff]   ;;  %v2648_v23 = vld [vmem:[#allocation5 + $0x264] ss:$48 sps:$4 sm:$0xff]  }
  0xa7   :  { %1246 = vmatprep.subr.bf16.mxu0 %v2558_v24  ;;  %1287 = vmatprep.subr.bf16.mxu1 %v2561_v25  ;;  %v2651_v24 = vld [vmem:[#allocation5 + $0x26c] ss:$48 sps:$4 sm:$0xff]   ;;  %v2646_v25 = vld [vmem:[#allocation5 + $0x260] ss:$48 sps:$4 sm:$0xff]  }
  0xaa   :  { %1247 = vmatpush1.bf16.msra.mxu0 %v2556_v26  ;;  %1288 = vmatpush1.bf16.msra.mxu1 %v2559_v27  ;;  %v2649_v26 = vld [vmem:[#allocation5 + $0x268] ss:$48 sps:$4 sm:$0xff]   ;;  %v2654_v27 = vld [vmem:[#allocation5 + $0x2c4] ss:$48 sps:$4 sm:$0xff]  }
  0xab   :  { %1248 = vmatprep.subr.bf16.mxu0 %v2564_v28  ;;  %1289 = vmatprep.subr.bf16.mxu1 %v2567_v29  ;;  %v2657_v28 = vld [vmem:[#allocation5 + $0x2cc] ss:$48 sps:$4 sm:$0xff]   ;;  %v2652_v29 = vld [vmem:[#allocation5 + $0x2c0] ss:$48 sps:$4 sm:$0xff]  }
  0xae   :  { %1249 = vmatpush1.bf16.msra.mxu0 %v2562_v30  ;;  %1290 = vmatpush1.bf16.msra.mxu1 %v2565_v31  ;;  %v2655_v30 = vld [vmem:[#allocation5 + $0x2c8] ss:$48 sps:$4 sm:$0xff]   ;;  %v2660_v31 = vld [vmem:[#allocation5 + $0x324] ss:$48 sps:$4 sm:$0xff]  }
  0xaf   :  { %1250 = vmatprep.subr.bf16.mxu0 %v2570_v32  ;;  %1291 = vmatprep.subr.bf16.mxu1 %v2573_v33  ;;  %v2663_v32 = vld [vmem:[#allocation5 + $0x32c] ss:$48 sps:$4 sm:$0xff]   ;;  %v2658_v33 = vld [vmem:[#allocation5 + $0x320] ss:$48 sps:$4 sm:$0xff]  }
  0xb2   :  { %1251 = vmatpush1.bf16.msra.mxu0 %v2568_v34  ;;  %1292 = vmatpush1.bf16.msra.mxu1 %v2571_v35  ;;  %v2661_v34 = vld [vmem:[#allocation5 + $0x328] ss:$48 sps:$4 sm:$0xff]   ;;  %v2666_v35 = vld [vmem:[#allocation5 + $0x384] ss:$48 sps:$4 sm:$0xff]  }
  0xb3   :  { %1252 = vmatprep.subr.bf16.mxu0 %v2576_v36  ;;  %1293 = vmatprep.subr.bf16.mxu1 %v2579_v37  ;;  %v2669_v36 = vld [vmem:[#allocation5 + $0x38c] ss:$48 sps:$4 sm:$0xff]   ;;  %v2664_v37 = vld [vmem:[#allocation5 + $0x380] ss:$48 sps:$4 sm:$0xff]  }
  0xb6   :  { %1253 = vmatpush1.bf16.msra.mxu0 %v2574_v38  ;;  %1294 = vmatpush1.bf16.msra.mxu1 %v2577_v39  ;;  %v2667_v38 = vld [vmem:[#allocation5 + $0x388] ss:$48 sps:$4 sm:$0xff]   ;;  %v2672_v39 = vld [vmem:[#allocation5 + $0x3e4] ss:$48 sps:$4 sm:$0xff]  }
  0xb7   :  { %1254 = vmatprep.subr.bf16.mxu0 %v2582_v40  ;;  %1295 = vmatprep.subr.bf16.mxu1 %v2585_v41  ;;  %v2675_v40 = vld [vmem:[#allocation5 + $0x3ec] ss:$48 sps:$4 sm:$0xff]   ;;  %v2670_v41 = vld [vmem:[#allocation5 + $0x3e0] ss:$48 sps:$4 sm:$0xff]  }
  0xba   :  { %1255 = vmatpush1.bf16.msra.mxu0 %v2580_v42  ;;  %1296 = vmatpush1.bf16.msra.mxu1 %v2583_v43  ;;  %v2673_v42 = vld [vmem:[#allocation5 + $0x3e8] ss:$48 sps:$4 sm:$0xff]   ;;  %v2678_v43 = vld [vmem:[#allocation5 + $0x444] ss:$48 sps:$4 sm:$0xff]  }
  0xbb   :  { %1256 = vmatprep.subr.bf16.mxu0 %v2588_v44  ;;  %1297 = vmatprep.subr.bf16.mxu1 %v2591_v45  ;;  %v2681_v44 = vld [vmem:[#allocation5 + $0x44c] ss:$48 sps:$4 sm:$0xff]   ;;  %v2676_v45 = vld [vmem:[#allocation5 + $0x440] ss:$48 sps:$4 sm:$0xff]  }
  0xbe   :  { %1257 = vmatpush1.bf16.msra.mxu0 %v2586_v46  ;;  %1298 = vmatpush1.bf16.msra.mxu1 %v2589_v47  ;;  %v2679_v46 = vld [vmem:[#allocation5 + $0x448] ss:$48 sps:$4 sm:$0xff]   ;;  %v2684_v47 = vld [vmem:[#allocation5 + $0x4a4] ss:$48 sps:$4 sm:$0xff]  }
  0xbf   :  { %1258 = vmatprep.subr.bf16.mxu0 %v2594_v48  ;;  %1299 = vmatprep.subr.bf16.mxu1 %v2597_v49  ;;  %v2687_v48 = vld [vmem:[#allocation5 + $0x4ac] ss:$48 sps:$4 sm:$0xff]   ;;  %v2682_v49 = vld [vmem:[#allocation5 + $0x4a0] ss:$48 sps:$4 sm:$0xff]  }
  0xc2   :  { %1259 = vmatpush1.bf16.msra.mxu0 %v2592_v50  ;;  %1300 = vmatpush1.bf16.msra.mxu1 %v2595_v51  ;;  %v2688_v50 = vld [vmem:[#allocation5 + $0x504] ss:$48 sps:$4 sm:$0x1f]   ;;  %v2685_v51 = vld [vmem:[#allocation5 + $0x4a8] ss:$48 sps:$4 sm:$0xff]  }
  0xc3   :  { %1260 = vmatprep.subr.bf16.mxu0 %v2600_v52  ;;  %1301 = vmatprep.subr.bf16.mxu1 %v2603_v53  ;;  %v2690_v52 = vld [vmem:[#allocation5 + $0x50c] ss:$48 sps:$4 sm:$0x1f]   ;;  %v1404_v53 = vld [vmem:[#allocation8 + $0x8] sm:$0xff] }
  0xc6   :  { %1261 = vmatpush1.bf16.msra.mxu0 %v2598_v55  ;;  %1302 = vmatpush1.bf16.msra.mxu1 %v2601_v56  ;;  %v2692_v55 = vld [vmem:[#allocation5 + $0x500] ss:$48 sps:$4 sm:$0x1f]   ;;  %v2693_v56 = vld [vmem:[#allocation5 + $0x508] ss:$48 sps:$4 sm:$0x1f]  }
  0xc7   :  { %2268 = vmatprep.subr.msk.bf16.mxu0 %vm1117_vm1, %v2604_v57  ;;  %2270 = vmatprep.subr.msk.bf16.mxu1 %vm1117_vm1, %v2606_v58  ;;  %v1408_v57 = vld [vmem:[#allocation8 + $0x28] sm:$0xff]  ;;  %v1406_v58 = vld [vmem:[#allocation8 + $0x18] sm:$0xff] }
  0xca   :  { %1263 = vmatpush1.bf16.msra.mxu0 %v1131_v62  ;;  %1304 = vmatpush1.bf16.msra.mxu1 %v1137_v63  ;;  %v1149_v62 = vsel %vm1117_vm1, %v2693_v56, 0  ;;  %v2352_v63 = vpack.c.bf16 %v1408_v57, %v1404_v53  ;;  %v1887_v53 = vld [vmem:[#allocation10 + $0x1b0] sm:$0xff] }
  0xcb   :  { %1318 = vmatprep.subr.bf16.mxu0 %v2612_v61  ;;  %1359 = vmatprep.subr.bf16.mxu1 %v2615_v0  ;;  %v1143_v61 = vsel %vm1117_vm1, %v2692_v55, 0  ;;  %v2356_v0 = vpack.c.bf16 %v1410_v59, %v1406_v58  ;;  %v1888_v58 = vld [vmem:[#allocation10 + $0x1b8] sm:$0xff] }
  0xcd   :  { %1269 = vmatmul.mubr.bf16.vlgmr.msra.gmra.mrb[4].mxu0 %v3014_v5  ;;  %1310 = vmatmul.mubr.bf16.vlgmr.msra.gmra.mrb[4].mxu1 %v3014_v5 }
  0xce   :  { %1319 = vmatpush1.bf16.msra.mxu0 %v2610_v1  ;;  %1360 = vmatpush1.bf16.msra.mxu1 %v2613_v2  ;;  %v1407_v1 = vld [vmem:[#allocation8 + $0x20] sm:$0xff]  ;;  %v1405_v2 = vld [vmem:[#allocation8 + $0x10] sm:$0xff] }
  0xcf   :  { %1320 = vmatprep.subr.bf16.mxu0 %v2618_v3  ;;  %1361 = vmatprep.subr.bf16.mxu1 %v2621_v4  ;;  %v1409_v3 = vld [vmem:[#allocation8 + $0x30] sm:$0xff]  ;;  %v2354_v4 = vpack.c.bf16 %v1407_v1, %v1403_v60  ;;  %v1840_v1 = vld [vmem:[#allocation10 + $0x38] sm:$0xff] }
  0xd0   :  { %2273 = vmatprep.mubr.msk.bf16.mxu0 %vm1113_vm0, %v3004_v54  ;;  %2275 = vmatprep.mubr.msk.bf16.mxu1 %vm1113_vm0, %v3004_v54  ;;  %v2637_v54 = vld [vmem:[#allocation5 + $0x1a8] ss:$48 sps:$4 sm:$0xff]  }
  0xd2   :  { %1321 = vmatpush1.bf16.msra.mxu0 %v2616_v6  ;;  %1362 = vmatpush1.bf16.msra.mxu1 %v2619_v7  ;;  %v2358_v6 = vpack.c.bf16 %v1409_v3, %v1405_v2  ;;  %v1412_v7 = vld [vmem:[#allocation8 + $0x48] sm:$0xff]  ;;  %v1871_v2 = vld [vmem:[#allocation10 + $0x130] sm:$0xff] }
  0xd3   :  { %1322 = vmatprep.subr.bf16.mxu0 %v2624_v8  ;;  %1363 = vmatprep.subr.bf16.mxu1 %v2627_v9  ;;  %v1414_v8 = vld [vmem:[#allocation8 + $0x58] sm:$0xff]  ;;  %v1411_v9 = vld [vmem:[#allocation8 + $0x40] sm:$0xff] }
  0xd6   :  { %1323 = vmatpush1.bf16.msra.mxu0 %v2622_v10  ;;  %1364 = vmatpush1.bf16.msra.mxu1 %v2625_v11  ;;  %v1413_v10 = vld [vmem:[#allocation8 + $0x50] sm:$0xff]  ;;  %v2892_v11 = vmov 0.0  }
  0xd7   :  { %1324 = vmatprep.subr.bf16.mxu0 %v2630_v12  ;;  %1365 = vmatprep.subr.bf16.mxu1 %v2633_v13  ;;  %v1400_v12 = vld [vmem:[#allocation7] sm:$0xff]  ;;  %v1401_v13 = vld [vmem:[#allocation7 + $0x8] sm:$0xff] }
  0xda   :  { %1325 = vmatpush1.bf16.msra.mxu0 %v2628_v14  ;;  %1366 = vmatpush1.bf16.msra.mxu1 %v2631_v15  ;;  %v1849_v14 = vld [vmem:[#allocation10 + $0x80] sm:$0xff]  ;;  %v1850_v15 = vld [vmem:[#allocation10 + $0x88] sm:$0xff] }
  0xdb   :  { %1326 = vmatprep.subr.bf16.mxu0 %v2636_v16  ;;  %1367 = vmatprep.subr.bf16.mxu1 %v2639_v17  ;;  %v1881_v16 = vld [vmem:[#allocation10 + $0x180] sm:$0xff]  ;;  %v2360_v17 = vpack.c.bf16 %v1850_v15, %v1849_v14 }
  0xdc   :  { %v1873_v14 = vld [vmem:[#allocation10 + $0x140] sm:$0xff] }
  0xde   :  { %1327 = vmatpush1.bf16.msra.mxu0 %v2634_v18  ;;  %1368 = vmatpush1.bf16.msra.mxu1 %v2637_v54  ;;  %v1882_v18 = vld [vmem:[#allocation10 + $0x188] sm:$0xff]  ;;  %v1833_v54 = vld [vmem:[#allocation10] sm:$0xff] }
  0xdf   :  { %1328 = vmatprep.subr.bf16.mxu0 %v2642_v19  ;;  %1369 = vmatprep.subr.bf16.mxu1 %v2645_v20  ;;  %v1834_v19 = vld [vmem:[#allocation10 + $0x8] sm:$0xff]  ;;  %v2392_v20 = vpack.c.bf16 %v1882_v18, %v1881_v16  ;;  %v1859_v18 = vld [vmem:[#allocation10 + $0xd0] sm:$0xff] }
  0xe0   :  { %v1874_v16 = vld [vmem:[#allocation10 + $0x148] sm:$0xff] }
  0xe2   :  { %1329 = vmatpush1.bf16.msra.mxu0 %v2640_v21  ;;  %1370 = vmatpush1.bf16.msra.mxu1 %v2643_v22  ;;  %v2362_v21 = vpack.c.bf16 %v1834_v19, %v1833_v54  ;;  %v1865_v22 = vld [vmem:[#allocation10 + $0x100] sm:$0xff]  ;;  %v1860_v54 = vld [vmem:[#allocation10 + $0xd8] sm:$0xff]  ;;  %v1891_v19 = vld [vmem:[#allocation10 + $0x1d0] sm:$0xff] }
  0xe3   :  { %1330 = vmatprep.subr.bf16.mxu0 %v2648_v23  ;;  %1371 = vmatprep.subr.bf16.mxu1 %v2651_v24  ;;  %v1866_v23 = vld [vmem:[#allocation10 + $0x108] sm:$0xff] }
  0xe4   :  { %v2394_v24 = vpack.c.bf16 %v1866_v23, %v1865_v22  ;;  %v1843_v22 = vld [vmem:[#allocation10 + $0x50] sm:$0xff]  ;;  %v1844_v23 = vld [vmem:[#allocation10 + $0x58] sm:$0xff] }
  0xe6   :  { %1331 = vmatpush1.bf16.msra.mxu0 %v2646_v25  ;;  %1372 = vmatpush1.bf16.msra.mxu1 %v2649_v26  ;;  %v1851_v25 = vld [vmem:[#allocation10 + $0x90] sm:$0xff]  ;;  %v1852_v26 = vld [vmem:[#allocation10 + $0x98] sm:$0xff] }
  0xe7   :  { %1332 = vmatprep.subr.bf16.mxu0 %v2654_v27  ;;  %1373 = vmatprep.subr.bf16.mxu1 %v2657_v28  ;;  %v1883_v27 = vld [vmem:[#allocation10 + $0x190] sm:$0xff]  ;;  %v2364_v28 = vpack.c.bf16 %v1852_v26, %v1851_v25  ;;  %v2382_v25 = vpack.c.bf16 %v1844_v23, %v1843_v22 }
  0xe8   :  { %v1875_v26 = vld [vmem:[#allocation10 + $0x150] sm:$0xff] }
  0xea   :  { %1333 = vmatpush1.bf16.msra.mxu0 %v2652_v29  ;;  %1374 = vmatpush1.bf16.msra.mxu1 %v2655_v30  ;;  %v1884_v29 = vld [vmem:[#allocation10 + $0x198] sm:$0xff]  ;;  %v1835_v30 = vld [vmem:[#allocation10 + $0x10] sm:$0xff] }
  0xeb   :  { %1334 = vmatprep.subr.bf16.mxu0 %v2660_v31  ;;  %1375 = vmatprep.subr.bf16.mxu1 %v2663_v32  ;;  %v1836_v31 = vld [vmem:[#allocation10 + $0x18] sm:$0xff]  ;;  %v2396_v32 = vpack.c.bf16 %v1884_v29, %v1883_v27  ;;  %v1861_v29 = vld [vmem:[#allocation10 + $0xe0] sm:$0xff] }
  0xec   :  { %v1876_v27 = vld [vmem:[#allocation10 + $0x158] sm:$0xff] }
  0xee   :  { %1335 = vmatpush1.bf16.msra.mxu0 %v2658_v33  ;;  %1376 = vmatpush1.bf16.msra.mxu1 %v2661_v34  ;;  %v2366_v33 = vpack.c.bf16 %v1836_v31, %v1835_v30  ;;  %v1867_v34 = vld [vmem:[#allocation10 + $0x110] sm:$0xff]  ;;  %v1862_v30 = vld [vmem:[#allocation10 + $0xe8] sm:$0xff]  ;;  %v1893_v31 = vld [vmem:[#allocation10 + $0x1e0] sm:$0xff] }
  0xef   :  { %1336 = vmatprep.subr.bf16.mxu0 %v2666_v35  ;;  %1377 = vmatprep.subr.bf16.mxu1 %v2669_v36  ;;  %v1868_v35 = vld [vmem:[#allocation10 + $0x118] sm:$0xff] }
  0xf0   :  { %v2398_v36 = vpack.c.bf16 %v1868_v35, %v1867_v34  ;;  %v1845_v34 = vld [vmem:[#allocation10 + $0x60] sm:$0xff]  ;;  %v1846_v35 = vld [vmem:[#allocation10 + $0x68] sm:$0xff] }
  0xf2   :  { %1337 = vmatpush1.bf16.msra.mxu0 %v2664_v37  ;;  %1378 = vmatpush1.bf16.msra.mxu1 %v2667_v38  ;;  %v1853_v37 = vld [vmem:[#allocation10 + $0xa0] sm:$0xff]  ;;  %v1854_v38 = vld [vmem:[#allocation10 + $0xa8] sm:$0xff] }
  0xf3   :  { %1338 = vmatprep.subr.bf16.mxu0 %v2672_v39  ;;  %1379 = vmatprep.subr.bf16.mxu1 %v2675_v40  ;;  %v1885_v39 = vld [vmem:[#allocation10 + $0x1a0] sm:$0xff]  ;;  %v2368_v40 = vpack.c.bf16 %v1854_v38, %v1853_v37  ;;  %v2386_v37 = vpack.c.bf16 %v1846_v35, %v1845_v34 }
  0xf4   :  { %v1877_v38 = vld [vmem:[#allocation10 + $0x160] sm:$0xff] }
  0xf6   :  { %1339 = vmatpush1.bf16.msra.mxu0 %v2670_v41  ;;  %1380 = vmatpush1.bf16.msra.mxu1 %v2673_v42  ;;  %v1886_v41 = vld [vmem:[#allocation10 + $0x1a8] sm:$0xff] }
  0xf7   :  { %1340 = vmatprep.subr.bf16.mxu0 %v2678_v43  ;;  %1381 = vmatprep.subr.bf16.mxu1 %v2681_v44  ;;  %v2400_v42 = vpack.c.bf16 %v1886_v41, %v1885_v39  ;;  %v1837_v43 = vld [vmem:[#allocation10 + $0x20] sm:$0xff]  ;;  %v1838_v44 = vld [vmem:[#allocation10 + $0x28] sm:$0xff] }
  0xf8   :  { %v1878_v39 = vld [vmem:[#allocation10 + $0x168] sm:$0xff] }
  0xf9   :  { %v2418_v41 = vpack.c.bf16 %v1878_v39, %v1877_v38 }
  0xfa   :  { %1341 = vmatpush1.bf16.msra.mxu0 %v2676_v45  ;;  %1382 = vmatpush1.bf16.msra.mxu1 %v2679_v46  ;;  %v1869_v45 = vld [vmem:[#allocation10 + $0x120] sm:$0xff]  ;;  %v2370_v46 = vpack.c.bf16 %v1838_v44, %v1837_v43  ;;  %v1895_v43 = vld [vmem:[#allocation10 + $0x1f0] sm:$0xff]  ;;  %v1896_v44 = vld [vmem:[#allocation10 + $0x1f8] sm:$0xff] }
  0xfb   :  { %1342 = vmatprep.subr.bf16.mxu0 %v2684_v47  ;;  %1383 = vmatprep.subr.bf16.mxu1 %v2687_v48  ;;  %v1870_v47 = vld [vmem:[#allocation10 + $0x128] sm:$0xff] }
  0xfc   :  { %v2402_v48 = vpack.c.bf16 %v1870_v47, %v1869_v45  ;;  %v1847_v47 = vld [vmem:[#allocation10 + $0x70] sm:$0xff] }
  0xfe   :  { %1343 = vmatpush1.bf16.msra.mxu0 %v2682_v49  ;;  %1384 = vmatpush1.bf16.msra.mxu1 %v2685_v51  ;;  %v1855_v51 = vld [vmem:[#allocation10 + $0xb0] sm:$0xff] }
  0xff   :  { %2272 = vmatprep.subr.msk.bf16.mxu0 %vm1117_vm1, %v2688_v50  ;;  %2274 = vmatprep.subr.msk.bf16.mxu1 %vm1117_vm1, %v2690_v52  ;;  %v1856_v52 = vld [vmem:[#allocation10 + $0xb8] sm:$0xff] }
 0x100   :  { %v2372_v57 = vpack.c.bf16 %v1856_v52, %v1855_v51  ;;  %v1879_v51 = vld [vmem:[#allocation10 + $0x170] sm:$0xff] }
 0x102   :  { %1345 = vmatpush1.bf16.msra.mxu0 %v1143_v61  ;;  %1386 = vmatpush1.bf16.msra.mxu1 %v1149_v62  ;;  %v2404_v61 = vpack.c.bf16 %v1888_v58, %v1887_v53  ;;  %v1880_v53 = vld [vmem:[#allocation10 + $0x178] sm:$0xff] }
 0x103   :  { %2353 = vmatprep.subr.bf16.mxu0 %v2352_v63  ;;  %2357 = vmatprep.subr.bf16.mxu1 %v2356_v0  ;;  %v1839_v0 = vld [vmem:[#allocation10 + $0x30] sm:$0xff] }
 0x104   :  { %v2374_v3 = vpack.c.bf16 %v1840_v1, %v1839_v0 }
 0x105   :  { %1351 = vmatmul.mubr.bf16.vlgmr.msra.gmra.mrb[8].mxu0 %v3014_v5  ;;  %1392 = vmatmul.mubr.bf16.vlgmr.msra.gmra.mrb[8].mxu1 %v3014_v5  ;;  %v1402_v5 = vld [vmem:[#allocation7 + $0x10] sm:$0xff] }
 0x106   :  { %2355 = vmatpush1.bf16.msra.mxu0 %v2354_v4  ;;  %2359 = vmatpush1.bf16.msra.mxu1 %v2358_v6  ;;  %v1872_v4 = vld [vmem:[#allocation10 + $0x138] sm:$0xff] }
 0x107   :  { %1429 = vmatprep.subr.mxu0 %v1412_v7  ;;  %1512 = vmatprep.subr.mxu1 %v1414_v8  ;;  %v2406_v6 = vpack.c.bf16 %v1872_v4, %v1871_v2  ;;  %v1857_v7 = vld [vmem:[#allocation10 + $0xc0] sm:$0xff]  ;;  %v1858_v8 = vld [vmem:[#allocation10 + $0xc8] sm:$0xff] }
 0x108   :  { %1489 = vmatprep.mubr.f32.mxu0 %v2892_v11  ;;  %1572 = vmatprep.mubr.f32.mxu1 %v2892_v11 }
 0x10a   :  { %1430 = vmatpush1.msra.mxu0 %v1411_v9  ;;  %1513 = vmatpush1.msra.mxu1 %v1413_v10  ;;  %v1889_v9 = vld [vmem:[#allocation10 + $0x1c0] sm:$0xff]  ;;  %v2376_v10 = vpack.c.bf16 %v1858_v8, %v1857_v7 }
 0x10b   :  { %2361 = vmatprep.subr.bf16.mxu0 %v2360_v17  ;;  %2393 = vmatprep.subr.bf16.mxu1 %v2392_v20  ;;  %v2410_v17 = vpack.c.bf16 %v1874_v16, %v1873_v14  ;;  %v2380_v20 = vpack.c.bf16 %v1860_v54, %v1859_v18 }
 0x10d   :  { %2276 = vmatmul.mubr.msk.f32.vlgmr.msra.gmra.mrb[12].mxu0 %vm1415_vm2, %v1400_v12  ;;  %2279 = vmatmul.mubr.msk.f32.vlgmr.msra.gmra.mrb[12].mxu1 %vm1415_vm2, %v1400_v12 }
 0x10e   :  { %1495 = vmatprep.mubr.f32.mxu0 %v2892_v11  ;;  %1578 = vmatprep.mubr.f32.mxu1 %v2892_v11 }
 0x10f   :  { %2363 = vmatpush3.bf16.msra.mxu0 %v2362_v21  ;;  %2395 = vmatpush3.bf16.msra.mxu1 %v2394_v24  ;;  %v1892_v21 = vld [vmem:[#allocation10 + $0x1d8] sm:$0xff] }
 0x110   :  { %2365 = vmatprep.subr.bf16.mxu0 %v2364_v28  ;;  %2397 = vmatprep.subr.bf16.mxu1 %v2396_v32  ;;  %v2412_v24 = vpack.c.bf16 %v1892_v21, %v1891_v19  ;;  %v2414_v28 = vpack.c.bf16 %v1876_v27, %v1875_v26  ;;  %v2384_v32 = vpack.c.bf16 %v1862_v30, %v1861_v29 }
 0x111   :  { %2277 = vmatmul.mubr.msk.f32.gmra.mrb[14].mxu0 %vm1415_vm2, %v1401_v13  ;;  %2280 = vmatmul.mubr.msk.f32.gmra.mrb[14].mxu1 %vm1415_vm2, %v1401_v13  ;;  %v1841_v13 = vld [vmem:[#allocation10 + $0x40] sm:$0xff] }
 0x112   :  { %1501 = vmatprep.mubr.f32.mxu0 %v2892_v11  ;;  %1584 = vmatprep.mubr.f32.mxu1 %v2892_v11  ;;  %v1890_v11 = vld [vmem:[#allocation10 + $0x1c8] sm:$0xff] }
 0x113   :  { %2367 = vmatpush3.bf16.msra.mxu0 %v2366_v33  ;;  %2399 = vmatpush3.bf16.msra.mxu1 %v2398_v36  ;;  %v2408_v12 = vpack.c.bf16 %v1890_v11, %v1889_v9  ;;  %v1894_v33 = vld [vmem:[#allocation10 + $0x1e8] sm:$0xff] }
 0x114   :  { %2369 = vmatprep.subr.bf16.mxu0 %v2368_v40  ;;  %2401 = vmatprep.subr.bf16.mxu1 %v2400_v42  ;;  %v2416_v36 = vpack.c.bf16 %v1894_v33, %v1893_v31  ;;  %v1863_v40 = vld [vmem:[#allocation10 + $0xf0] sm:$0xff]  ;;  %v1864_v42 = vld [vmem:[#allocation10 + $0xf8] sm:$0xff] }
 0x115   :  { %2278 = vmatmul.mubr.msk.f32.gmra.mrb[16].mxu0 %vm1415_vm2, %v1402_v5  ;;  %2281 = vmatmul.mubr.msk.f32.gmra.mrb[16].mxu1 %vm1415_vm2, %v1402_v5  ;;  %v1842_v5 = vld [vmem:[#allocation10 + $0x48] sm:$0xff]  ;;  %v2388_v45 = vpack.c.bf16 %v1864_v42, %v1863_v40 }
 0x116   :  { %v2378_v15 = vpack.c.bf16 %v1842_v5, %v1841_v13 }
 0x117   :  { %2371 = vmatpush3.bf16.msra.mxu0 %v2370_v46  ;;  %2403 = vmatpush3.bf16.msra.mxu1 %v2402_v48  ;;  %v2420_v46 = vpack.c.bf16 %v1896_v44, %v1895_v43  ;;  %v1848_v48 = vld [vmem:[#allocation10 + $0x78] sm:$0xff] }
 0x118   :  { %2373 = vmatprep.subr.bf16.mxu0 %v2372_v57  ;;  %2405 = vmatprep.subr.bf16.mxu1 %v2404_v61  ;;  %v2390_v52 = vpack.c.bf16 %v1848_v48, %v1847_v47  ;;  %v2422_v57 = vpack.c.bf16 %v1880_v53, %v1879_v51 }
 0x11b   :  { %2375 = vmatpush3.bf16.msra.mxu0 %v2374_v3  ;;  %2407 = vmatpush3.bf16.msra.mxu1 %v2406_v6 }
 0x11c   :  { %2377 = vmatprep.subr.bf16.mxu0 %v2376_v10  ;;  %2409 = vmatprep.subr.bf16.mxu1 %v2408_v12 }
 0x11f   :  { %2379 = vmatpush3.bf16.msra.mxu0 %v2378_v15  ;;  %2411 = vmatpush3.bf16.msra.mxu1 %v2410_v17 }
 0x120   :  { %2381 = vmatprep.subr.bf16.mxu0 %v2380_v20  ;;  %2413 = vmatprep.subr.bf16.mxu1 %v2412_v24 }
 0x123   :  { %2383 = vmatpush3.bf16.msra.mxu0 %v2382_v25  ;;  %2415 = vmatpush3.bf16.msra.mxu1 %v2414_v28 }
 0x124   :  { %2385 = vmatprep.subr.bf16.mxu0 %v2384_v32  ;;  %2417 = vmatprep.subr.bf16.mxu1 %v2416_v36 }
 0x127   :  { %2387 = vmatpush3.bf16.msra.mxu0 %v2386_v37  ;;  %2419 = vmatpush3.bf16.msra.mxu1 %v2418_v41 }
 0x128   :  { %2389 = vmatprep.subr.bf16.mxu0 %v2388_v45  ;;  %2421 = vmatprep.subr.bf16.mxu1 %v2420_v46 }
 0x12b   :  { %2391 = vmatpush3.bf16.msra.mxu0 %v2390_v52  ;;  %2423 = vmatpush3.bf16.msra.mxu1 %v2422_v57 }
 0x168   :  { %v3038_v49 = vpop.f32.mrb[0].mxu0  ;;  %v3040_v50 = vpop.f32.mrb[0].mxu1 }
 0x169   :  { %v3042_v55 = vpop.f32.mrb[1].mxu0  ;;  %v3044_v56 = vpop.f32.mrb[1].mxu1 }
 0x16a   :  { %v1192_v59 = vpop.f32.mrb[2].mxu0  ;;  %v1233_v60 = vpop.f32.mrb[2].mxu1 }
 0x16b   :  { %v1193_v62 = vpop.f32.mrb[3].mxu0  ;;  %v1234_v63 = vpop.f32.mrb[3].mxu1 }
 0x1a0   :  { %v1270_v58 = vpop.f32.mrb[4].mxu0  ;;  %v1311_v59 = vpop.f32.mrb[4].mxu1 }
 0x1a1   :  { %v1272_v60 = vpop.f32.mrb[5].mxu0  ;;  %v1313_v61 = vpop.f32.mrb[5].mxu1  ;;  %v3046_v11 = vrot.slane %v1270_v58, 6  ;;  %v3050_v13 = vrot.slane %v1311_v59, 6 }
 0x1a2   :  { %v1274_v62 = vpop.f32.mrb[6].mxu0  ;;  %v1315_v63 = vpop.f32.mrb[6].mxu1  ;;  %v3052_v5 = vrot.slane %v1272_v60, 6  ;;  %v3054_v14 = vrot.slane %v1313_v61, 6 }
 0x1a3   :  { %v1275_v0 = vpop.f32.mrb[7].mxu0  ;;  %v1316_v1 = vpop.f32.mrb[7].mxu1 }
 0x1d8   :  { %v1352_v2 = vpop.f32.mrb[8].mxu0  ;;  %v1393_v3 = vpop.f32.mrb[8].mxu1 }
 0x1d9   :  { %v1354_v4 = vpop.f32.mrb[9].mxu0  ;;  %v1395_v6 = vpop.f32.mrb[9].mxu1  ;;  %v3048_v12 = vrot.slane %v1352_v2, 4  ;;  %v3056_v15 = vrot.slane %v1393_v3, 4 }
 0x1da   :  { %v1356_v7 = vpop.f32.mrb[10].mxu0  ;;  %v1397_v8 = vpop.f32.mrb[10].mxu1  ;;  %v3058_v18 = vrot.slane %v1354_v4, 4  ;;  %v3063_v23 = vrot.slane %v1395_v6, 4 }
 0x1db   :  { %v1357_v9 = vpop.f32.mrb[11].mxu0  ;;  %v1398_v10 = vpop.f32.mrb[11].mxu1 }
 0x1e0   :  { %v1491_v16 = vpop.f32.mrb[12].mxu0  ;;  %v1574_v17 = vpop.f32.mrb[12].mxu1 }
 0x1e1   :  { %v1591_v54 = vmul.f32 %v1491_v16, %v3038_v49  ;;  %v1607_v19 = vmul.f32 %v3046_v11, %v1491_v16  ;;  %v1639_v20 = vmul.f32 %v3048_v12, %v1491_v16  ;;  %v1493_v21 = vpop.f32.mrb[13].mxu0  ;;  %v1576_v22 = vpop.f32.mrb[13].mxu1  ;;  %v1593_v24 = vmul.f32 %v1574_v17, %v3040_v50 }
 0x1e2   :  { %v1609_v25 = vmul.f32 %v3050_v13, %v1574_v17  ;;  %v1641_v26 = vmul.f32 %v3056_v15, %v1574_v17  ;;  %v1663_v28 = vrot.slane %v1491_v16, 6  ;;  %v1592_v29 = vmul.f32 %v1493_v21, %v3042_v55 }
 0x1e3   :  { %v1615_v27 = vrot.slane %v1607_v19, 2  ;;  %v1608_v30 = vmul.f32 %v3052_v5, %v1493_v21  ;;  %v1647_v31 = vrot.slane %v1639_v20, 4  ;;  %v1665_v33 = vrot.slane %v1574_v17, 6 }
 0x1e4   :  { %v1617_v32 = vrot.slane %v1609_v25, 2  ;;  %v1640_v34 = vmul.f32 %v3058_v18, %v1493_v21  ;;  %v1497_v35 = vpop.f32.mrb[14].mxu0  ;;  %v3071_v36 = vpop.f32.mrb[14].mxu1  ;;  %v1594_v39 = vmul.f32 %v1576_v22, %v3044_v56  ;;  %v1610_v40 = vmul.f32 %v3054_v14, %v1576_v22 }
 0x1e5   :  { %v1623_v37 = vadd.f32 %v1615_v27, %v1591_v54  ;;  %v1616_v38 = vrot.slane %v1608_v30, 2  ;;  %v3075_v41 = vpop.f32.mrb[15].mxu0  ;;  %v3077_v42 = vpop.f32.mrb[15].mxu1  ;;  %v1649_v44 = vrot.slane %v1641_v26, 4  ;;  %v1642_v46 = vmul.f32 %v3063_v23, %v1576_v22 }
 0x1e6   :  { %v1625_v43 = vadd.f32 %v1617_v32, %v1593_v24  ;;  %v1648_v45 = vrot.slane %v1640_v34, 4  ;;  %v1618_v51 = vrot.slane %v1610_v40, 2  ;;  %v1675_v52 = vmul.f32 %v1497_v35, %v3038_v49 }
 0x1e7   :  { %v1655_v47 = vadd.f32 %v1647_v31, %v1623_v37  ;;  %v1624_v48 = vadd.f32 %v1616_v38, %v1592_v29  ;;  %v1664_v57 = vrot.slane %v1493_v21, 6  ;;  %v1679_v58 = vmul.f32 %v3046_v11, %v1497_v35 }
 0x1e8   :  { %v1657_v53 = vadd.f32 %v1649_v44, %v1625_v43  ;;  %v1699_v59 = vmul.f32 %v3048_v12, %v1497_v35  ;;  %v3083_v60 = vpop.f32.mrb[16].mxu0  ;;  %v3085_v61 = vpop.f32.mrb[16].mxu1  ;;  %v1626_v0 = vadd.f32 %v1618_v51, %v1594_v39  ;;  %v1650_v1 = vrot.slane %v1642_v46, 4 }
 0x1e9   :  { %v3087_v62 = vadd.f32 %v1663_v28, %v1655_v47  ;;  %v1656_v63 = vadd.f32 %v1648_v45, %v1624_v48  ;;  %v3089_v2 = vpop.f32.mrb[17].mxu0  ;;  %v3091_v3 = vpop.f32.mrb[17].mxu1  ;;  %v1666_v6 = vrot.slane %v1576_v22, 6  ;;  %v1687_v7 = vrot.slane %v1679_v58, 2 }
 0x1ea   :  { %v3093_v4 = vadd.f32 %v1665_v33, %v1657_v53  ;;  %v1677_v8 = vmul.f32 %v3071_v36, %v3040_v50  ;;  %v1658_v10 = vadd.f32 %v1650_v1, %v1626_v0  ;;  %v1681_v16 = vmul.f32 %v3050_v13, %v3071_v36 }
 0x1eb   :  { %v3097_v9 = vadd.f32 %v1664_v57, %v1656_v63  ;;  %v1701_v17 = vmul.f32 %v3056_v15, %v3071_v36  ;;  %v1695_v54 = vadd.f32 %v1687_v7, %v1675_v52  ;;  %v1707_v19 = vrot.slane %v1699_v59, 4 }
 0x1ec   :  { %v1676_v20 = vmul.f32 %v3075_v41, %v3042_v55  ;;  %v1680_v21 = vmul.f32 %v3052_v5, %v3075_v41  ;;  %v1674_v22 = vadd.f32 %v1666_v6, %v1658_v10  ;;  %v1723_v24 = vrot.slane %v1497_v35, 6 }
 0x1ed   :  { %v1689_v25 = vrot.slane %v1681_v16, 2  ;;  %v1700_v26 = vmul.f32 %v3058_v18, %v3075_v41  ;;  %v1715_v27 = vadd.f32 %v1707_v19, %v1695_v54  ;;  %v1725_v28 = vrot.slane %v3071_v36, 6 }
 0x1ee   :  { %v1688_v29 = vrot.slane %v1680_v21, 2  ;;  %v1678_v30 = vmul.f32 %v3077_v42, %v3044_v56  ;;  %v1709_v32 = vrot.slane %v1701_v17, 4  ;;  %v1682_v33 = vmul.f32 %v3054_v14, %v3077_v42 }
 0x1ef   :  { %v1697_v31 = vadd.f32 %v1689_v25, %v1677_v8  ;;  %v1702_v34 = vmul.f32 %v3063_v23, %v3077_v42  ;;  %v1731_v35 = vadd.f32 %v1723_v24, %v1715_v27  ;;  %v1708_v38 = vrot.slane %v1700_v26, 4 }
 0x1f0   :  { %v1696_v37 = vadd.f32 %v1688_v29, %v1676_v20  ;;  %v1735_v39 = vmul.f32 %v3083_v60, %v3038_v49  ;;  %v1724_v40 = vrot.slane %v3075_v41, 6  ;;  %v1690_v43 = vrot.slane %v1682_v33, 2 }
 0x1f1   :  { %v1717_v36 = vadd.f32 %v1709_v32, %v1697_v31  ;;  %v1739_v44 = vmul.f32 %v3046_v11, %v3083_v60  ;;  %v1710_v46 = vrot.slane %v1702_v34, 4  ;;  %v1726_v47 = vrot.slane %v3077_v42, 6 }
 0x1f2   :  { %v1716_v45 = vadd.f32 %v1708_v38, %v1696_v37  ;;  %v1759_v48 = vmul.f32 %v3048_v12, %v3083_v60  ;;  %v1698_v52 = vadd.f32 %v1690_v43, %v1678_v30  ;;  %v1737_v49 = vmul.f32 %v3085_v61, %v3040_v50 }
 0x1f3   :  { %v1733_v51 = vadd.f32 %v1725_v28, %v1717_v36  ;;  %v1747_v53 = vrot.slane %v1739_v44, 2  ;;  %v1799_v57 = vrot.slane %v1731_v35, 6  ;;  %v1741_v58 = vmul.f32 %v3050_v13, %v3085_v61 }
 0x1f4   :  { %v1732_v41 = vadd.f32 %v1724_v40, %v1716_v45  ;;  %v1761_v11 = vmul.f32 %v3056_v15, %v3085_v61  ;;  %v1718_v59 = vadd.f32 %v1710_v46, %v1698_v52  ;;  %v1767_v63 = vrot.slane %v1759_v48, 4 }
 0x1f5   :  { %v1755_v42 = vadd.f32 %v1747_v53, %v1735_v39  ;;  %v1783_v12 = vrot.slane %v3083_v60, 6  ;;  %v1801_v0 = vrot.slane %v1733_v51, 6  ;;  %v1749_v6 = vrot.slane %v1741_v58, 2 }
 0x1f6   :  { %v1800_v1 = vrot.slane %v1732_v41, 6  ;;  %v1736_v7 = vmul.f32 %v3089_v2, %v3042_v55  ;;  %v1734_v50 = vadd.f32 %v1726_v47, %v1718_v59  ;;  %v1740_v10 = vmul.f32 %v3052_v5, %v3089_v2 }
 0x1f7   :  { %v1775_v8 = vadd.f32 %v1767_v63, %v1755_v42  ;;  %v1760_v13 = vmul.f32 %v3058_v18, %v3089_v2  ;;  %v1757_v15 = vadd.f32 %v1749_v6, %v1737_v49  ;;  %v1769_v16 = vrot.slane %v1761_v11, 4 }
 0x1f8   :  { %v1738_v17 = vmul.f32 %v3091_v3, %v3044_v56  ;;  %v1742_v60 = vmul.f32 %v3054_v14, %v3091_v3  ;;  %v1802_v54 = vrot.slane %v1734_v50, 6  ;;  %v1785_v55 = vrot.slane %v3085_v61, 6 }
 0x1f9   :  { %v1791_v19 = vadd.f32 %v1783_v12, %v1775_v8  ;;  %v1748_v20 = vrot.slane %v1740_v10, 2  ;;  %v1777_v21 = vadd.f32 %v1769_v16, %v1757_v15  ;;  %v1768_v24 = vrot.slane %v1760_v13, 4 }
 0x1fa   :  { %v1750_v25 = vrot.slane %v1742_v60, 2  ;;  %v1762_v5 = vmul.f32 %v3063_v23, %v3091_v3  ;;  %v1821_v27 = vsel %vm1819_vm3, %v3097_v9, %v1800_v1  ;;  %v1823_v56 = vsel %vm1819_vm3, %v1674_v22, %v1802_v54 }
 0x1fb   :  { %v1811_v18 = vrot.slane %v1791_v19, 4  ;;  %v1756_v26 = vadd.f32 %v1748_v20, %v1736_v7  ;;  %v1793_v28 = vadd.f32 %v1785_v55, %v1777_v21  ;;  %v1820_v61 = vsel %vm1819_vm3, %v3087_v62, %v1799_v57 }
 0x1fc   :  { %v1758_v14 = vadd.f32 %v1750_v25, %v1738_v17  ;;  %v1770_v29 = vrot.slane %v1762_v5, 4  ;;  %v1784_v31 = vrot.slane %v3089_v2, 6  ;;  %v1822_v23 = vsel %vm1819_vm3, %v3093_v4, %v1801_v0 }
 0x1fd   :  { %v1776_v30 = vadd.f32 %v1768_v24, %v1756_v26  ;;  %v1825_v32 = vsel %vm1824_vm4, %v1820_v61, %v1811_v18  ;;  %v1813_v33 = vrot.slane %v1793_v28, 4  ;;  %v1786_v9 = vrot.slane %v3091_v3, 6 }
 0x1fe   :  { %v1778_v34 = vadd.f32 %v1770_v29, %v1758_v14  ;;  %1829 = vst [vmem:[#allocation11] sm:$0x3f] %v1825_v32  ;;  %v2893_v4 = vmov 0  }
 0x1ff   :  { %v1792_v22 = vadd.f32 %v1784_v31, %v1776_v30  ;;  %v1827_v37 = vsel %vm1824_vm4, %v1822_v23, %v1813_v33  ;;  %2441 = vset.pattern.permute.xlu0 %v2893_v4 }
 0x200   :  { %v1794_v35 = vadd.f32 %v1786_v9, %v1778_v34  ;;  %1831 = vst [vmem:[#allocation11 + $0x10] sm:$0x3f] %v1827_v37 }
 0x201   :  { %v1812_v38 = vrot.slane %v1792_v22, 4 }
 0x202   :  { %v1814_v62 = vrot.slane %v1794_v35, 4 }
 0x203   :  { %v1826_v39 = vsel %vm1824_vm4, %v1821_v27, %v1812_v38 }
 0x204   :  { %1830 = vst [vmem:[#allocation11 + $0x8] sm:$0x3f] %v1826_v39  ;;  %1961 = vmatprep.mubr.f32.mxu0 %v1826_v39  ;;  %v1828_v2 = vsel %vm1824_vm4, %v1823_v56, %v1814_v62 }
 0x205   :  { %1832 = vst [vmem:[#allocation11 + $0x18] sm:$0x3f] %v1828_v2  ;;  %2031 = vmatprep.mubr.f32.mxu1 %v1828_v2  ;;  %1962 = vmatmul.mubr.f32.vlgmr.msra.gmra.mrb[18].mxu0 %v1825_v32 }
 0x206   :  { %2032 = vmatmul.mubr.f32.vlgmr.msra.gmra.mrb[18].mxu1 %v1827_v37 }
 0x2d8   :  { %v2314_v3 = vpop.f32.mrb[18].mxu0 }
 0x2d9   :  { %v2349_v36 = vpop.f32.mrb[18].mxu1  ;;  %v2315_v40 = vpop.f32.mrb[19].mxu0 }
 0x2da   :  { %v2316_v43 = vadd.f32 %v2315_v40, %v2314_v3  ;;  %v2350_v44 = vpop.f32.mrb[19].mxu1 }
 0x2db   :  { %v2351_v45 = vadd.f32 %v2350_v44, %v2349_v36 }
 0x2dd   :  { %v2034_v46 = vadd.f32 %v2351_v45, %v2316_v43 }
 0x2df   :  { %2040 = vperm.xlu0 %2441, %v2034_v46   ;;  %2037 = vst [vmem:[#allocation14] sm:$0x3f] %v2034_v46 }
 0x2e0   :  { %2815 = shalt.err (!%p2812_p2)
}
 0x2e1   :  { %s2816_s19 = scalar_lea.hbm %s3205_s5, 512 }
 0x2e2   :  { %p2817_p3 = scmp.ne.s32.totalorder %s3205_s5, %s2816_s19  ;;  %p2820_p4 = scmp.lt.u32.totalorder %s2816_s19, %s3205_s5 }
 0x2e4   :  { %p2822_p5 = pnand %p2820_p4, %p2817_p3 }
 0x2e6   :  { %2825 = shalt.err (!%p2822_p5)
}
 0x2e7   :  { %2060 = dma.vmem_to_hbm [thread:$0]  %s2058_s3, 512, %s3205_s5, [#allocation4]  }
 0x2e8   :  { %s2895_s0 = smov [#allocation12]   ;;  %s2896_s26 = smov [#allocation14]  }
 0x2e9   :  { %s2067_s25 = sshll.u32 %s2895_s0, 4  ;;  %s2077_s27 = sshll.u32 %s2896_s26, 4  ;;  %s2068_s25 = int_to_ptr.vmem [resolvable:$true] %s2067_s25  ;;  %s3169_s27 = int_to_ptr.vmem [resolvable:$true] %s2077_s27 }
 0x2ea   :  { %s2826_s28 = scalar_lea.vmem %s2068_s25, 512  ;;  %p2831_p7 = scmp.lt.s32.totalorder %s2068_s25, %s2068_s25 }
 0x2eb   :  { %p2827_p6 = scmp.ne.s32.totalorder %s2068_s25, %s2826_s28  ;;  %p2832_p8 = scmp.lt.s32.totalorder %s2826_s28, %s2826_s28 }
 0x2ed   :  { %p2833_p9 = por %p2832_p8, %p2831_p7 }
 0x2ef   :  { %p2834_p10 = pnand %p2833_p9, %p2827_p6 }
 0x35e   :  { %v2041_v47 = vpop.permute.xlu0 %2040 }
 0x35f   :  { %v2043_v48 = vsub.f32 %v1825_v32, %v2041_v47  ;;  %v2044_v51 = vsub.f32 %v1826_v39, %v2041_v47  ;;  %v2045_v52 = vsub.f32 %v1827_v37, %v2041_v47  ;;  %v2046_v53 = vsub.f32 %v1828_v2, %v2041_v47 }
 0x361   :  { %2047 = vst [vmem:[#allocation12] sm:$0x3f] %v2043_v48  ;;  %2048 = vst [vmem:[#allocation12 + $0x8] sm:$0x3f] %v2044_v51 }
 0x362   :  { %2049 = vst [vmem:[#allocation12 + $0x10] sm:$0x3f] %v2045_v52  ;;  %2050 = vst [vmem:[#allocation12 + $0x18] sm:$0x3f] %v2046_v53 }
 0x363   :  { %2837 = shalt.err (!%p2834_p10)
}
 0x364   :  { %s2838_s30 = scalar_lea.hbm %s3206_s6, 512 }
 0x365   :  { %p2839_p11 = scmp.ne.s32.totalorder %s3206_s6, %s2838_s30  ;;  %p2842_p12 = scmp.lt.u32.totalorder %s2838_s30, %s3206_s6 }
 0x367   :  { %p2844_p13 = pnand %p2842_p12, %p2839_p11 }
 0x369   :  { %2847 = shalt.err (!%p2844_p13)
}
 0x36a   :  { %2070 = dma.vmem_to_hbm [thread:$0]  %s2068_s25, 512, %s3206_s6, [#allocation13]  }
 0x36b   :  { %s2848_s15 = scalar_lea.vmem %s3169_s27, 128  ;;  %p2853_p1 = scmp.lt.s32.totalorder %s3169_s27, %s3169_s27 }
 0x36c   :  { %p2849_p0 = scmp.ne.s32.totalorder %s3169_s27, %s2848_s15  ;;  %p2854_p2 = scmp.lt.s32.totalorder %s2848_s15, %s2848_s15 }
 0x36e   :  { %p2855_p3 = por %p2854_p2, %p2853_p1 }
 0x370   :  { %p2856_p4 = pnand %p2855_p3, %p2849_p0 }
 0x372   :  { %2859 = shalt.err (!%p2856_p4)
}
 0x373   :  { %s2860_s4 = scalar_lea.hbm %s3207_s7, 128 }
 0x374   :  { %p2861_p5 = scmp.ne.s32.totalorder %s3207_s7, %s2860_s4  ;;  %p2864_p6 = scmp.lt.u32.totalorder %s2860_s4, %s3207_s7 }
 0x376   :  { %p2866_p7 = pnand %p2864_p6, %p2861_p5 }
 0x378   :  { %2869 = shalt.err (!%p2866_p7)
}
 0x379   :  { %2080 = dma.vmem_to_hbm [thread:$0]  %s3169_s27, 128, %s3207_s7, [#allocation13]  }
 0x37a   :  { %2876 = dma.done.wait [#allocation4], 512  }
 0x37b   :  { %2877 = vsyncadd [#allocation4], 4294966784 }
 0x37c   :  { %2878 = dma.done.wait [#allocation13], 640  }
 0x37d   :  { %2879 = vsyncadd [#allocation13], 4294966656 }
 0x37e   :  { %2090 = vsyncpa [#allocation3], 1 }
 0x37f   :  { %2091 = vsyncpa [#allocation6], 1 }
 0x380   :  { %2092 = vsyncpa [#allocation9], 1 }
 0x381   :  { %2093 = vsyncpa [#allocation4], 1 }
 0x382   :  { %2094 = vsyncpa [#allocation13], 1 }

</bundles_post_ra>
